<compile_context>
chip_gen: v5e
topology: v5e:2x2
jax: 0.10.0
libtpu: 0.0.40
codegen_flags: <defaults>
</compile_context>

<pallas_src>
import functools

import jax
import jax.numpy as jnp
import numpy as np
from jax.experimental import pallas as pl
from jax.experimental.pallas import tpu as pltpu

EMBEDDING_DIM = 3
N_HIDDEN = 7
NUM_CLASSES = 2
VOCAB_SIZE = 20   # original derives this from TaskDataMatrix; pick a small value


def _bilstm_attention_kernel(x_ref,
                             wih_f_ref, whh_f_ref, b_f_ref,
                             wih_b_ref, whh_b_ref, b_b_ref,
                             wout_f_ref, wout_b_ref, bout_ref,
                             logits_ref, attn_ref,
                             *, S, B, H):
    f32 = jnp.float32
    x2d = x_ref[...]                                   # (S*B, E), row = t*B + b
    whh_f = whh_f_ref[...]                             # (H, 4H)
    whh_b = whh_b_ref[...]                             # (H, 4H)

    # Input projections hoisted off the recurrent critical path: one matmul
    # per direction covering all timesteps, bias added once.
    xw_f = jnp.dot(x2d, wih_f_ref[...], preferred_element_type=f32) + b_f_ref[...]
    xw_b = jnp.dot(x2d, wih_b_ref[...], preferred_element_type=f32) + b_b_ref[...]

    def sigmoid(z):
        # tanh form: single EUP transcendental, no divide, stable for |z| large.
        return 0.5 * (jnp.tanh(0.5 * z) + 1.0)

    def cell(pre, c):
        gates = sigmoid(pre)                           # one EUP pass over (B, 4H)
        i_g = gates[:, 0 * H:1 * H]
        f_g = gates[:, 1 * H:2 * H]
        o_g = gates[:, 3 * H:4 * H]
        g_g = jnp.tanh(pre[:, 2 * H:3 * H])
        c_new = f_g * c + i_g * g_g
        h_new = o_g * jnp.tanh(c_new)
        return h_new, c_new

    zero = jnp.zeros((B, H), f32)
    h_f, c_f = zero, zero
    h_b, c_b = zero, zero
    hf_steps = [None] * S
    hb_steps = [None] * S

    # Fully unrolled recurrence, both directions interleaved (independent
    # chains -> 2x ILP for the scheduler to hide MXU/EUP result latency).
    for s in range(S):
        tb = S - 1 - s
        pre_f = xw_f[s * B:(s + 1) * B, :] + jnp.dot(
            h_f, whh_f, preferred_element_type=f32)
        pre_b = xw_b[tb * B:(tb + 1) * B, :] + jnp.dot(
            h_b, whh_b, preferred_element_type=f32)
        h_f, c_f = cell(pre_f, c_f)
        h_b, c_b = cell(pre_b, c_b)
        hf_steps[s] = h_f
        hb_steps[tb] = h_b

    # Reproduce torch's final_hidden_state.view(-1, 2H) exactly: row-major
    # regrouping of the (2, B, H) [direction, batch, hidden] stack.  NOTE:
    # this intentionally mixes direction and batch rows (faithful to the
    # upstream module); the divmod mapping below is valid for any B.
    finals = (h_f, h_b)
    first_rows, second_rows = [], []
    for b in range(B):
        d0, r0 = divmod(2 * b, B)
        d1, r1 = divmod(2 * b + 1, B)
        first_rows.append(finals[d0][r0:r0 + 1, :])
        second_rows.append(finals[d1][r1:r1 + 1, :])
    hid_first = jnp.concatenate(first_rows, axis=0)    # (B, H) == hidden[:, :H]
    hid_second = jnp.concatenate(second_rows, axis=0)  # (B, H) == hidden[:, H:]

    # attn_weights[b, s] = <lstm_output[b, s, :], hidden[b, :]>, built directly
    # in lane-major (B, S) layout (register-level, no scratch stores).
    lane = jax.lax.broadcasted_iota(jnp.int32, (B, S), 1)
    aw = jnp.zeros((B, S), f32)
    for s in range(S):
        col = (jnp.sum(hf_steps[s] * hid_first, axis=-1, keepdims=True)
               + jnp.sum(hb_steps[s] * hid_second, axis=-1, keepdims=True))  # (B,1)
        aw = aw + jnp.where(lane == s, col, 0.0)

    m = jnp.max(aw, axis=1, keepdims=True)
    e = jnp.exp(aw - m)
    # approx=True is viable here, but the exact reciprocal is off the critical
    # path and keeps tight parity with the reference at 1e-3 tolerances.
    soft = e * pl.reciprocal(jnp.sum(e, axis=1, keepdims=True), approx=False)

    ctx_f = jnp.zeros((B, H), f32)
    ctx_b = jnp.zeros((B, H), f32)
    for s in range(S):
        w_s = soft[:, s:s + 1]
        ctx_f = ctx_f + hf_steps[s] * w_s
        ctx_b = ctx_b + hb_steps[s] * w_s

    logits = (jnp.dot(ctx_f, wout_f_ref[...], preferred_element_type=f32)
              + jnp.dot(ctx_b, wout_b_ref[...], preferred_element_type=f32)
              + bout_ref[...])

    logits_ref[...] = logits
    attn_ref[...] = soft


def bilstm_attention_forward(X, params):
    B, S = X.shape
    H = N_HIDDEN
    C = NUM_CLASSES

    # Embedding gather + permute(1, 0, 2) stay in plain JAX (layout glue).
    # TODO(synk): nn.Embedding gather left outside the kernel (data-dependent
    # gather at these tiny sizes is not worth a manual-DMA Pallas gather).
    emb = jnp.take(params["embedding"], X, axis=0).astype(jnp.float32)    # (B, S, E)
    x2d = jnp.transpose(emb, (1, 0, 2)).reshape(S * B, EMBEDDING_DIM)     # row = t*B + b

    def fuse(w_ih, w_hh, b_ih, b_hh):
        # PyTorch packs gates as [i|f|g|o] along dim 0; transposing keeps that
        # order along the fused 4H output axis.
        return (jnp.transpose(w_ih),                  # (E, 4H)
                jnp.transpose(w_hh),                  # (H, 4H)
                (b_ih + b_hh).reshape(1, 4 * H))      # (1, 4H)

    wih_f, whh_f, b_f = fuse(params["w_ih_f"], params["w_hh_f"],
                             params["b_ih_f"], params["b_hh_f"])
    wih_b, whh_b, b_b = fuse(params["w_ih_b"], params["w_hh_b"],
                             params["b_ih_b"], params["b_hh_b"])

    wout_f = jnp.transpose(params["w_out"][:, :H])    # (H, C)
    wout_b = jnp.transpose(params["w_out"][:, H:])    # (H, C)
    bout = params["b_out"].reshape(1, C)

    vmem = pl.BlockSpec(memory_space=pltpu.MemorySpace.VMEM)
    kernel = functools.partial(_bilstm_attention_kernel, S=S, B=B, H=H)
    # TODO(synk): at B=2 a batch/task grid axis (dimension_semantics=("parallel",))
    # for the second v7x TensorCore is not worth the per-step overhead; add it
    # only if many MAML tasks are batched per call.
    logits, attn = pl.pallas_call(
        kernel,
        out_shape=(jax.ShapeDtypeStruct((B, C), jnp.float32),
                   jax.ShapeDtypeStruct((B, S), jnp.float32)),
        in_specs=[vmem] * 10,
        out_specs=(vmem, vmem),
    )(x2d, wih_f, whh_f, b_f, wih_b, whh_b, b_b, wout_f, wout_b, bout)
    return logits, attn                                # (B, C), (B, S)


def reference_forward(X, params):
    """Pure-JAX replica of the PyTorch forward (for correctness check)."""
    B, S = X.shape
    H = N_HIDDEN
    emb = jnp.take(params["embedding"], X, axis=0).astype(jnp.float32)   # (B, S, E)
    x = jnp.transpose(emb, (1, 0, 2))                                     # (S, B, E)

    def run_dir(w_ih, w_hh, b_ih, b_hh, order):
        h = jnp.zeros((B, H), jnp.float32)
        c = jnp.zeros((B, H), jnp.float32)
        b = b_ih + b_hh
        outs = [None] * S
        for t in order:
            pre = x[t] @ w_ih.T + h @ w_hh.T + b
            i_g = jax.nn.sigmoid(pre[:, 0:H])
            f_g = jax.nn.sigmoid(pre[:, H:2 * H])
            g_g = jnp.tanh(pre[:, 2 * H:3 * H])
            o_g = jax.nn.sigmoid(pre[:, 3 * H:4 * H])
            c = f_g * c + i_g * g_g
            h = o_g * jnp.tanh(c)
            outs[t] = h
        return outs, h

    outs_f, hf = run_dir(params["w_ih_f"], params["w_hh_f"],
                         params["b_ih_f"], params["b_hh_f"], range(S))
    outs_b, hb = run_dir(params["w_ih_b"], params["w_hh_b"],
                         params["b_ih_b"], params["b_hh_b"], range(S - 1, -1, -1))

    out = jnp.stack([jnp.concatenate([outs_f[t], outs_b[t]], axis=-1)
                     for t in range(S)], axis=0)          # (S, B, 2H)
    out_bt = jnp.transpose(out, (1, 0, 2))                # (B, S, 2H)
    final = jnp.stack([hf, hb], axis=0)                   # (2, B, H)
    hidden = final.reshape(B, 2 * H)                      # torch .view(-1, 2H)

    aw = jnp.einsum("bsd,bd->bs", out_bt, hidden)         # (B, S)
    m = jnp.max(aw, axis=1, keepdims=True)
    e = jnp.exp(aw - m)
    soft = e / jnp.sum(e, axis=1, keepdims=True)
    ctx = jnp.einsum("bsd,bs->bd", out_bt, soft)          # (B, 2H)
    logits = ctx @ params["w_out"].T + params["b_out"]
    return logits, soft


if __name__ == "__main__":
    B, S = 2, 8
    key = jax.random.PRNGKey(0)
    keys = jax.random.split(key, 12)
    k_lstm = 1.0 / float(np.sqrt(N_HIDDEN))
    k_lin = 1.0 / float(np.sqrt(2 * N_HIDDEN))

    params = {
        "embedding": jax.random.normal(keys[0], (VOCAB_SIZE, EMBEDDING_DIM), jnp.float32),
        "w_ih_f": jax.random.uniform(keys[1], (4 * N_HIDDEN, EMBEDDING_DIM), jnp.float32, -k_lstm, k_lstm),
        "w_hh_f": jax.random.uniform(keys[2], (4 * N_HIDDEN, N_HIDDEN), jnp.float32, -k_lstm, k_lstm),
        "b_ih_f": jax.random.uniform(keys[3], (4 * N_HIDDEN,), jnp.float32, -k_lstm, k_lstm),
        "b_hh_f": jax.random.uniform(keys[4], (4 * N_HIDDEN,), jnp.float32, -k_lstm, k_lstm),
        "w_ih_b": jax.random.uniform(keys[5], (4 * N_HIDDEN, EMBEDDING_DIM), jnp.float32, -k_lstm, k_lstm),
        "w_hh_b": jax.random.uniform(keys[6], (4 * N_HIDDEN, N_HIDDEN), jnp.float32, -k_lstm, k_lstm),
        "b_ih_b": jax.random.uniform(keys[7], (4 * N_HIDDEN,), jnp.float32, -k_lstm, k_lstm),
        "b_hh_b": jax.random.uniform(keys[8], (4 * N_HIDDEN,), jnp.float32, -k_lstm, k_lstm),
        "w_out": jax.random.uniform(keys[9], (NUM_CLASSES, 2 * N_HIDDEN), jnp.float32, -k_lin, k_lin),
        "b_out": jax.random.uniform(keys[10], (NUM_CLASSES,), jnp.float32, -k_lin, k_lin),
    }
    X = jax.random.randint(keys[11], (B, S), 0, VOCAB_SIZE, dtype=jnp.int32)

    logits, attn = bilstm_attention_forward(X, params)
    jax.block_until_ready((logits, attn))

    ref_logits, ref_attn = reference_forward(X, params)
    assert logits.shape == (B, NUM_CLASSES) and attn.shape == (B, S)
    np.testing.assert_allclose(np.asarray(logits), np.asarray(ref_logits), rtol=1e-3, atol=1e-3)
    np.testing.assert_allclose(np.asarray(attn), np.asarray(ref_attn), rtol=1e-3, atol=1e-3)
    print("KERNEL_OK")
</pallas_src>

<mosaic_0001>
module attributes {stable_mosaic.version = 11 : i64} {
  func.func @_bilstm_attention_kernel(%arg0: memref<16x3xf32, #tpu.memory_space<vmem>>, %arg1: memref<3x28xf32, #tpu.memory_space<vmem>>, %arg2: memref<7x28xf32, #tpu.memory_space<vmem>>, %arg3: memref<1x28xf32, #tpu.memory_space<vmem>>, %arg4: memref<3x28xf32, #tpu.memory_space<vmem>>, %arg5: memref<7x28xf32, #tpu.memory_space<vmem>>, %arg6: memref<1x28xf32, #tpu.memory_space<vmem>>, %arg7: memref<7x2xf32, #tpu.memory_space<vmem>>, %arg8: memref<7x2xf32, #tpu.memory_space<vmem>>, %arg9: memref<1x2xf32, #tpu.memory_space<vmem>>, %arg10: memref<2x2xf32, #tpu.memory_space<vmem>>, %arg11: memref<2x8xf32, #tpu.memory_space<vmem>>) attributes {dimension_semantics = [], scalar_prefetch = 0 : i64, scratch_operands = 0 : i64, tpu.core_type = #tpu.core_type<tc>} {
    %c0 = arith.constant 0 : index
    %c0_0 = arith.constant 0 : index
    %0 = vector.load %arg0[%c0, %c0_0] : memref<16x3xf32, #tpu.memory_space<vmem>>, vector<16x3xf32>
    %c0_1 = arith.constant 0 : index
    %c0_2 = arith.constant 0 : index
    %1 = vector.load %arg2[%c0_1, %c0_2] : memref<7x28xf32, #tpu.memory_space<vmem>>, vector<7x28xf32>
    %c0_3 = arith.constant 0 : index
    %c0_4 = arith.constant 0 : index
    %2 = vector.load %arg5[%c0_3, %c0_4] : memref<7x28xf32, #tpu.memory_space<vmem>>, vector<7x28xf32>
    %c0_5 = arith.constant 0 : index
    %c0_6 = arith.constant 0 : index
    %3 = vector.load %arg1[%c0_5, %c0_6] : memref<3x28xf32, #tpu.memory_space<vmem>>, vector<3x28xf32>
    %cst = arith.constant dense<0.000000e+00> : vector<16x28xf32>
    %4 = tpu.matmul %0, %3, %cst {dimension_numbers = #tpu.dot_dimension_numbers<[1], [0], [0], [1], [0, 0, 1, 1], [], []>} : vector<16x3xf32>, vector<3x28xf32>, vector<16x28xf32> -> vector<16x28xf32>
    %c0_7 = arith.constant 0 : index
    %c0_8 = arith.constant 0 : index
    %5 = vector.load %arg3[%c0_7, %c0_8] : memref<1x28xf32, #tpu.memory_space<vmem>>, vector<1x28xf32>
    %6 = vector.broadcast %5 : vector<1x28xf32> to vector<16x28xf32>
    %7 = arith.addf %4, %6 : vector<16x28xf32>
    %c0_9 = arith.constant 0 : index
    %c0_10 = arith.constant 0 : index
    %8 = vector.load %arg4[%c0_9, %c0_10] : memref<3x28xf32, #tpu.memory_space<vmem>>, vector<3x28xf32>
    %cst_11 = arith.constant dense<0.000000e+00> : vector<16x28xf32>
    %9 = tpu.matmul %0, %8, %cst_11 {dimension_numbers = #tpu.dot_dimension_numbers<[1], [0], [0], [1], [0, 0, 1, 1], [], []>} : vector<16x3xf32>, vector<3x28xf32>, vector<16x28xf32> -> vector<16x28xf32>
    %c0_12 = arith.constant 0 : index
    %c0_13 = arith.constant 0 : index
    %10 = vector.load %arg6[%c0_12, %c0_13] : memref<1x28xf32, #tpu.memory_space<vmem>>, vector<1x28xf32>
    %11 = vector.broadcast %10 : vector<1x28xf32> to vector<16x28xf32>
    %12 = arith.addf %9, %11 : vector<16x28xf32>
    %cst_14 = arith.constant 0.000000e+00 : f32
    %13 = vector.broadcast %cst_14 : f32 to vector<2x7xf32>
    %14 = vector.extract_strided_slice %7 {offsets = [0, 0], sizes = [2, 28], strides = [1, 1]} : vector<16x28xf32> to vector<2x28xf32>
    %cst_15 = arith.constant dense<0.000000e+00> : vector<2x28xf32>
    %15 = tpu.matmul %13, %1, %cst_15 {dimension_numbers = #tpu.dot_dimension_numbers<[1], [0], [0], [1], [0, 0, 1, 1], [], []>} : vector<2x7xf32>, vector<7x28xf32>, vector<2x28xf32> -> vector<2x28xf32>
    %16 = arith.addf %14, %15 : vector<2x28xf32>
    %17 = vector.extract_strided_slice %12 {offsets = [14, 0], sizes = [2, 28], strides = [1, 1]} : vector<16x28xf32> to vector<2x28xf32>
    %cst_16 = arith.constant dense<0.000000e+00> : vector<2x28xf32>
    %18 = tpu.matmul %13, %2, %cst_16 {dimension_numbers = #tpu.dot_dimension_numbers<[1], [0], [0], [1], [0, 0, 1, 1], [], []>} : vector<2x7xf32>, vector<7x28xf32>, vector<2x28xf32> -> vector<2x28xf32>
    %19 = arith.addf %17, %18 : vector<2x28xf32>
    %cst_17 = arith.constant 5.000000e-01 : f32
    %20 = vector.broadcast %cst_17 : f32 to vector<2x28xf32>
    %21 = arith.mulf %20, %16 : vector<2x28xf32>
    %22 = math.tanh %21 : vector<2x28xf32>
    %cst_18 = arith.constant 1.000000e+00 : f32
    %23 = vector.broadcast %cst_18 : f32 to vector<2x28xf32>
    %24 = arith.addf %22, %23 : vector<2x28xf32>
    %cst_19 = arith.constant 5.000000e-01 : f32
    %25 = vector.broadcast %cst_19 : f32 to vector<2x28xf32>
    %26 = arith.mulf %25, %24 : vector<2x28xf32>
    %27 = vector.extract_strided_slice %26 {offsets = [0, 0], sizes = [2, 7], strides = [1, 1]} : vector<2x28xf32> to vector<2x7xf32>
    %28 = vector.extract_strided_slice %26 {offsets = [0, 7], sizes = [2, 7], strides = [1, 1]} : vector<2x28xf32> to vector<2x7xf32>
    %29 = vector.extract_strided_slice %26 {offsets = [0, 21], sizes = [2, 7], strides = [1, 1]} : vector<2x28xf32> to vector<2x7xf32>
    %30 = vector.extract_strided_slice %16 {offsets = [0, 14], sizes = [2, 7], strides = [1, 1]} : vector<2x28xf32> to vector<2x7xf32>
    %31 = math.tanh %30 : vector<2x7xf32>
    %32 = arith.mulf %28, %13 : vector<2x7xf32>
    %33 = arith.mulf %27, %31 : vector<2x7xf32>
    %34 = arith.addf %32, %33 : vector<2x7xf32>
    %35 = math.tanh %34 : vector<2x7xf32>
    %36 = arith.mulf %29, %35 : vector<2x7xf32>
    %cst_20 = arith.constant 5.000000e-01 : f32
    %37 = vector.broadcast %cst_20 : f32 to vector<2x28xf32>
    %38 = arith.mulf %37, %19 : vector<2x28xf32>
    %39 = math.tanh %38 : vector<2x28xf32>
    %cst_21 = arith.constant 1.000000e+00 : f32
    %40 = vector.broadcast %cst_21 : f32 to vector<2x28xf32>
    %41 = arith.addf %39, %40 : vector<2x28xf32>
    %cst_22 = arith.constant 5.000000e-01 : f32
    %42 = vector.broadcast %cst_22 : f32 to vector<2x28xf32>
    %43 = arith.mulf %42, %41 : vector<2x28xf32>
    %44 = vector.extract_strided_slice %43 {offsets = [0, 0], sizes = [2, 7], strides = [1, 1]} : vector<2x28xf32> to vector<2x7xf32>
    %45 = vector.extract_strided_slice %43 {offsets = [0, 7], sizes = [2, 7], strides = [1, 1]} : vector<2x28xf32> to vector<2x7xf32>
    %46 = vector.extract_strided_slice %43 {offsets = [0, 21], sizes = [2, 7], strides = [1, 1]} : vector<2x28xf32> to vector<2x7xf32>
    %47 = vector.extract_strided_slice %19 {offsets = [0, 14], sizes = [2, 7], strides = [1, 1]} : vector<2x28xf32> to vector<2x7xf32>
    %48 = math.tanh %47 : vector<2x7xf32>
    %49 = arith.mulf %45, %13 : vector<2x7xf32>
    %50 = arith.mulf %44, %48 : vector<2x7xf32>
    %51 = arith.addf %49, %50 : vector<2x7xf32>
    %52 = math.tanh %51 : vector<2x7xf32>
    %53 = arith.mulf %46, %52 : vector<2x7xf32>
    %54 = vector.extract_strided_slice %7 {offsets = [2, 0], sizes = [2, 28], strides = [1, 1]} : vector<16x28xf32> to vector<2x28xf32>
    %cst_23 = arith.constant dense<0.000000e+00> : vector<2x28xf32>
    %55 = tpu.matmul %36, %1, %cst_23 {dimension_numbers = #tpu.dot_dimension_numbers<[1], [0], [0], [1], [0, 0, 1, 1], [], []>} : vector<2x7xf32>, vector<7x28xf32>, vector<2x28xf32> -> vector<2x28xf32>
    %56 = arith.addf %54, %55 : vector<2x28xf32>
    %57 = vector.extract_strided_slice %12 {offsets = [12, 0], sizes = [2, 28], strides = [1, 1]} : vector<16x28xf32> to vector<2x28xf32>
    %cst_24 = arith.constant dense<0.000000e+00> : vector<2x28xf32>
    %58 = tpu.matmul %53, %2, %cst_24 {dimension_numbers = #tpu.dot_dimension_numbers<[1], [0], [0], [1], [0, 0, 1, 1], [], []>} : vector<2x7xf32>, vector<7x28xf32>, vector<2x28xf32> -> vector<2x28xf32>
    %59 = arith.addf %57, %58 : vector<2x28xf32>
    %cst_25 = arith.constant 5.000000e-01 : f32
    %60 = vector.broadcast %cst_25 : f32 to vector<2x28xf32>
    %61 = arith.mulf %60, %56 : vector<2x28xf32>
    %62 = math.tanh %61 : vector<2x28xf32>
    %cst_26 = arith.constant 1.000000e+00 : f32
    %63 = vector.broadcast %cst_26 : f32 to vector<2x28xf32>
    %64 = arith.addf %62, %63 : vector<2x28xf32>
    %cst_27 = arith.constant 5.000000e-01 : f32
    %65 = vector.broadcast %cst_27 : f32 to vector<2x28xf32>
    %66 = arith.mulf %65, %64 : vector<2x28xf32>
    %67 = vector.extract_strided_slice %66 {offsets = [0, 0], sizes = [2, 7], strides = [1, 1]} : vector<2x28xf32> to vector<2x7xf32>
    %68 = vector.extract_strided_slice %66 {offsets = [0, 7], sizes = [2, 7], strides = [1, 1]} : vector<2x28xf32> to vector<2x7xf32>
    %69 = vector.extract_strided_slice %66 {offsets = [0, 21], sizes = [2, 7], strides = [1, 1]} : vector<2x28xf32> to vector<2x7xf32>
    %70 = vector.extract_strided_slice %56 {offsets = [0, 14], sizes = [2, 7], strides = [1, 1]} : vector<2x28xf32> to vector<2x7xf32>
    %71 = math.tanh %70 : vector<2x7xf32>
    %72 = arith.mulf %68, %34 : vector<2x7xf32>
    %73 = arith.mulf %67, %71 : vector<2x7xf32>
    %74 = arith.addf %72, %73 : vector<2x7xf32>
    %75 = math.tanh %74 : vector<2x7xf32>
    %76 = arith.mulf %69, %75 : vector<2x7xf32>
    %cst_28 = arith.constant 5.000000e-01 : f32
    %77 = vector.broadcast %cst_28 : f32 to vector<2x28xf32>
    %78 = arith.mulf %77, %59 : vector<2x28xf32>
    %79 = math.tanh %78 : vector<2x28xf32>
    %cst_29 = arith.constant 1.000000e+00 : f32
    %80 = vector.broadcast %cst_29 : f32 to vector<2x28xf32>
    %81 = arith.addf %79, %80 : vector<2x28xf32>
    %cst_30 = arith.constant 5.000000e-01 : f32
    %82 = vector.broadcast %cst_30 : f32 to vector<2x28xf32>
    %83 = arith.mulf %82, %81 : vector<2x28xf32>
    %84 = vector.extract_strided_slice %83 {offsets = [0, 0], sizes = [2, 7], strides = [1, 1]} : vector<2x28xf32> to vector<2x7xf32>
    %85 = vector.extract_strided_slice %83 {offsets = [0, 7], sizes = [2, 7], strides = [1, 1]} : vector<2x28xf32> to vector<2x7xf32>
    %86 = vector.extract_strided_slice %83 {offsets = [0, 21], sizes = [2, 7], strides = [1, 1]} : vector<2x28xf32> to vector<2x7xf32>
    %87 = vector.extract_strided_slice %59 {offsets = [0, 14], sizes = [2, 7], strides = [1, 1]} : vector<2x28xf32> to vector<2x7xf32>
    %88 = math.tanh %87 : vector<2x7xf32>
    %89 = arith.mulf %85, %51 : vector<2x7xf32>
    %90 = arith.mulf %84, %88 : vector<2x7xf32>
    %91 = arith.addf %89, %90 : vector<2x7xf32>
    %92 = math.tanh %91 : vector<2x7xf32>
    %93 = arith.mulf %86, %92 : vector<2x7xf32>
    %94 = vector.extract_strided_slice %7 {offsets = [4, 0], sizes = [2, 28], strides = [1, 1]} : vector<16x28xf32> to vector<2x28xf32>
    %cst_31 = arith.constant dense<0.000000e+00> : vector<2x28xf32>
    %95 = tpu.matmul %76, %1, %cst_31 {dimension_numbers = #tpu.dot_dimension_numbers<[1], [0], [0], [1], [0, 0, 1, 1], [], []>} : vector<2x7xf32>, vector<7x28xf32>, vector<2x28xf32> -> vector<2x28xf32>
    %96 = arith.addf %94, %95 : vector<2x28xf32>
    %97 = vector.extract_strided_slice %12 {offsets = [10, 0], sizes = [2, 28], strides = [1, 1]} : vector<16x28xf32> to vector<2x28xf32>
    %cst_32 = arith.constant dense<0.000000e+00> : vector<2x28xf32>
    %98 = tpu.matmul %93, %2, %cst_32 {dimension_numbers = #tpu.dot_dimension_numbers<[1], [0], [0], [1], [0, 0, 1, 1], [], []>} : vector<2x7xf32>, vector<7x28xf32>, vector<2x28xf32> -> vector<2x28xf32>
    %99 = arith.addf %97, %98 : vector<2x28xf32>
    %cst_33 = arith.constant 5.000000e-01 : f32
    %100 = vector.broadcast %cst_33 : f32 to vector<2x28xf32>
    %101 = arith.mulf %100, %96 : vector<2x28xf32>
    %102 = math.tanh %101 : vector<2x28xf32>
    %cst_34 = arith.constant 1.000000e+00 : f32
    %103 = vector.broadcast %cst_34 : f32 to vector<2x28xf32>
    %104 = arith.addf %102, %103 : vector<2x28xf32>
    %cst_35 = arith.constant 5.000000e-01 : f32
    %105 = vector.broadcast %cst_35 : f32 to vector<2x28xf32>
    %106 = arith.mulf %105, %104 : vector<2x28xf32>
    %107 = vector.extract_strided_slice %106 {offsets = [0, 0], sizes = [2, 7], strides = [1, 1]} : vector<2x28xf32> to vector<2x7xf32>
    %108 = vector.extract_strided_slice %106 {offsets = [0, 7], sizes = [2, 7], strides = [1, 1]} : vector<2x28xf32> to vector<2x7xf32>
    %109 = vector.extract_strided_slice %106 {offsets = [0, 21], sizes = [2, 7], strides = [1, 1]} : vector<2x28xf32> to vector<2x7xf32>
    %110 = vector.extract_strided_slice %96 {offsets = [0, 14], sizes = [2, 7], strides = [1, 1]} : vector<2x28xf32> to vector<2x7xf32>
    %111 = math.tanh %110 : vector<2x7xf32>
    %112 = arith.mulf %108, %74 : vector<2x7xf32>
    %113 = arith.mulf %107, %111 : vector<2x7xf32>
    %114 = arith.addf %112, %113 : vector<2x7xf32>
    %115 = math.tanh %114 : vector<2x7xf32>
    %116 = arith.mulf %109, %115 : vector<2x7xf32>
    %cst_36 = arith.constant 5.000000e-01 : f32
    %117 = vector.broadcast %cst_36 : f32 to vector<2x28xf32>
    %118 = arith.mulf %117, %99 : vector<2x28xf32>
    %119 = math.tanh %118 : vector<2x28xf32>
    %cst_37 = arith.constant 1.000000e+00 : f32
    %120 = vector.broadcast %cst_37 : f32 to vector<2x28xf32>
    %121 = arith.addf %119, %120 : vector<2x28xf32>
    %cst_38 = arith.constant 5.000000e-01 : f32
    %122 = vector.broadcast %cst_38 : f32 to vector<2x28xf32>
    %123 = arith.mulf %122, %121 : vector<2x28xf32>
    %124 = vector.extract_strided_slice %123 {offsets = [0, 0], sizes = [2, 7], strides = [1, 1]} : vector<2x28xf32> to vector<2x7xf32>
    %125 = vector.extract_strided_slice %123 {offsets = [0, 7], sizes = [2, 7], strides = [1, 1]} : vector<2x28xf32> to vector<2x7xf32>
    %126 = vector.extract_strided_slice %123 {offsets = [0, 21], sizes = [2, 7], strides = [1, 1]} : vector<2x28xf32> to vector<2x7xf32>
    %127 = vector.extract_strided_slice %99 {offsets = [0, 14], sizes = [2, 7], strides = [1, 1]} : vector<2x28xf32> to vector<2x7xf32>
    %128 = math.tanh %127 : vector<2x7xf32>
    %129 = arith.mulf %125, %91 : vector<2x7xf32>
    %130 = arith.mulf %124, %128 : vector<2x7xf32>
    %131 = arith.addf %129, %130 : vector<2x7xf32>
    %132 = math.tanh %131 : vector<2x7xf32>
    %133 = arith.mulf %126, %132 : vector<2x7xf32>
    %134 = vector.extract_strided_slice %7 {offsets = [6, 0], sizes = [2, 28], strides = [1, 1]} : vector<16x28xf32> to vector<2x28xf32>
    %cst_39 = arith.constant dense<0.000000e+00> : vector<2x28xf32>
    %135 = tpu.matmul %116, %1, %cst_39 {dimension_numbers = #tpu.dot_dimension_numbers<[1], [0], [0], [1], [0, 0, 1, 1], [], []>} : vector<2x7xf32>, vector<7x28xf32>, vector<2x28xf32> -> vector<2x28xf32>
    %136 = arith.addf %134, %135 : vector<2x28xf32>
    %137 = vector.extract_strided_slice %12 {offsets = [8, 0], sizes = [2, 28], strides = [1, 1]} : vector<16x28xf32> to vector<2x28xf32>
    %cst_40 = arith.constant dense<0.000000e+00> : vector<2x28xf32>
    %138 = tpu.matmul %133, %2, %cst_40 {dimension_numbers = #tpu.dot_dimension_numbers<[1], [0], [0], [1], [0, 0, 1, 1], [], []>} : vector<2x7xf32>, vector<7x28xf32>, vector<2x28xf32> -> vector<2x28xf32>
    %139 = arith.addf %137, %138 : vector<2x28xf32>
    %cst_41 = arith.constant 5.000000e-01 : f32
    %140 = vector.broadcast %cst_41 : f32 to vector<2x28xf32>
    %141 = arith.mulf %140, %136 : vector<2x28xf32>
    %142 = math.tanh %141 : vector<2x28xf32>
    %cst_42 = arith.constant 1.000000e+00 : f32
    %143 = vector.broadcast %cst_42 : f32 to vector<2x28xf32>
    %144 = arith.addf %142, %143 : vector<2x28xf32>
    %cst_43 = arith.constant 5.000000e-01 : f32
    %145 = vector.broadcast %cst_43 : f32 to vector<2x28xf32>
    %146 = arith.mulf %145, %144 : vector<2x28xf32>
    %147 = vector.extract_strided_slice %146 {offsets = [0, 0], sizes = [2, 7], strides = [1, 1]} : vector<2x28xf32> to vector<2x7xf32>
    %148 = vector.extract_strided_slice %146 {offsets = [0, 7], sizes = [2, 7], strides = [1, 1]} : vector<2x28xf32> to vector<2x7xf32>
    %149 = vector.extract_strided_slice %146 {offsets = [0, 21], sizes = [2, 7], strides = [1, 1]} : vector<2x28xf32> to vector<2x7xf32>
    %150 = vector.extract_strided_slice %136 {offsets = [0, 14], sizes = [2, 7], strides = [1, 1]} : vector<2x28xf32> to vector<2x7xf32>
    %151 = math.tanh %150 : vector<2x7xf32>
    %152 = arith.mulf %148, %114 : vector<2x7xf32>
    %153 = arith.mulf %147, %151 : vector<2x7xf32>
    %154 = arith.addf %152, %153 : vector<2x7xf32>
    %155 = math.tanh %154 : vector<2x7xf32>
    %156 = arith.mulf %149, %155 : vector<2x7xf32>
    %cst_44 = arith.constant 5.000000e-01 : f32
    %157 = vector.broadcast %cst_44 : f32 to vector<2x28xf32>
    %158 = arith.mulf %157, %139 : vector<2x28xf32>
    %159 = math.tanh %158 : vector<2x28xf32>
    %cst_45 = arith.constant 1.000000e+00 : f32
    %160 = vector.broadcast %cst_45 : f32 to vector<2x28xf32>
    %161 = arith.addf %159, %160 : vector<2x28xf32>
    %cst_46 = arith.constant 5.000000e-01 : f32
    %162 = vector.broadcast %cst_46 : f32 to vector<2x28xf32>
    %163 = arith.mulf %162, %161 : vector<2x28xf32>
    %164 = vector.extract_strided_slice %163 {offsets = [0, 0], sizes = [2, 7], strides = [1, 1]} : vector<2x28xf32> to vector<2x7xf32>
    %165 = vector.extract_strided_slice %163 {offsets = [0, 7], sizes = [2, 7], strides = [1, 1]} : vector<2x28xf32> to vector<2x7xf32>
    %166 = vector.extract_strided_slice %163 {offsets = [0, 21], sizes = [2, 7], strides = [1, 1]} : vector<2x28xf32> to vector<2x7xf32>
    %167 = vector.extract_strided_slice %139 {offsets = [0, 14], sizes = [2, 7], strides = [1, 1]} : vector<2x28xf32> to vector<2x7xf32>
    %168 = math.tanh %167 : vector<2x7xf32>
    %169 = arith.mulf %165, %131 : vector<2x7xf32>
    %170 = arith.mulf %164, %168 : vector<2x7xf32>
    %171 = arith.addf %169, %170 : vector<2x7xf32>
    %172 = math.tanh %171 : vector<2x7xf32>
    %173 = arith.mulf %166, %172 : vector<2x7xf32>
    %174 = vector.extract_strided_slice %7 {offsets = [8, 0], sizes = [2, 28], strides = [1, 1]} : vector<16x28xf32> to vector<2x28xf32>
    %cst_47 = arith.constant dense<0.000000e+00> : vector<2x28xf32>
    %175 = tpu.matmul %156, %1, %cst_47 {dimension_numbers = #tpu.dot_dimension_numbers<[1], [0], [0], [1], [0, 0, 1, 1], [], []>} : vector<2x7xf32>, vector<7x28xf32>, vector<2x28xf32> -> vector<2x28xf32>
    %176 = arith.addf %174, %175 : vector<2x28xf32>
    %177 = vector.extract_strided_slice %12 {offsets = [6, 0], sizes = [2, 28], strides = [1, 1]} : vector<16x28xf32> to vector<2x28xf32>
    %cst_48 = arith.constant dense<0.000000e+00> : vector<2x28xf32>
    %178 = tpu.matmul %173, %2, %cst_48 {dimension_numbers = #tpu.dot_dimension_numbers<[1], [0], [0], [1], [0, 0, 1, 1], [], []>} : vector<2x7xf32>, vector<7x28xf32>, vector<2x28xf32> -> vector<2x28xf32>
    %179 = arith.addf %177, %178 : vector<2x28xf32>
    %cst_49 = arith.constant 5.000000e-01 : f32
    %180 = vector.broadcast %cst_49 : f32 to vector<2x28xf32>
    %181 = arith.mulf %180, %176 : vector<2x28xf32>
    %182 = math.tanh %181 : vector<2x28xf32>
    %cst_50 = arith.constant 1.000000e+00 : f32
    %183 = vector.broadcast %cst_50 : f32 to vector<2x28xf32>
    %184 = arith.addf %182, %183 : vector<2x28xf32>
    %cst_51 = arith.constant 5.000000e-01 : f32
    %185 = vector.broadcast %cst_51 : f32 to vector<2x28xf32>
    %186 = arith.mulf %185, %184 : vector<2x28xf32>
    %187 = vector.extract_strided_slice %186 {offsets = [0, 0], sizes = [2, 7], strides = [1, 1]} : vector<2x28xf32> to vector<2x7xf32>
    %188 = vector.extract_strided_slice %186 {offsets = [0, 7], sizes = [2, 7], strides = [1, 1]} : vector<2x28xf32> to vector<2x7xf32>
    %189 = vector.extract_strided_slice %186 {offsets = [0, 21], sizes = [2, 7], strides = [1, 1]} : vector<2x28xf32> to vector<2x7xf32>
    %190 = vector.extract_strided_slice %176 {offsets = [0, 14], sizes = [2, 7], strides = [1, 1]} : vector<2x28xf32> to vector<2x7xf32>
    %191 = math.tanh %190 : vector<2x7xf32>
    %192 = arith.mulf %188, %154 : vector<2x7xf32>
    %193 = arith.mulf %187, %191 : vector<2x7xf32>
    %194 = arith.addf %192, %193 : vector<2x7xf32>
    %195 = math.tanh %194 : vector<2x7xf32>
    %196 = arith.mulf %189, %195 : vector<2x7xf32>
    %cst_52 = arith.constant 5.000000e-01 : f32
    %197 = vector.broadcast %cst_52 : f32 to vector<2x28xf32>
    %198 = arith.mulf %197, %179 : vector<2x28xf32>
    %199 = math.tanh %198 : vector<2x28xf32>
    %cst_53 = arith.constant 1.000000e+00 : f32
    %200 = vector.broadcast %cst_53 : f32 to vector<2x28xf32>
    %201 = arith.addf %199, %200 : vector<2x28xf32>
    %cst_54 = arith.constant 5.000000e-01 : f32
    %202 = vector.broadcast %cst_54 : f32 to vector<2x28xf32>
    %203 = arith.mulf %202, %201 : vector<2x28xf32>
    %204 = vector.extract_strided_slice %203 {offsets = [0, 0], sizes = [2, 7], strides = [1, 1]} : vector<2x28xf32> to vector<2x7xf32>
    %205 = vector.extract_strided_slice %203 {offsets = [0, 7], sizes = [2, 7], strides = [1, 1]} : vector<2x28xf32> to vector<2x7xf32>
    %206 = vector.extract_strided_slice %203 {offsets = [0, 21], sizes = [2, 7], strides = [1, 1]} : vector<2x28xf32> to vector<2x7xf32>
    %207 = vector.extract_strided_slice %179 {offsets = [0, 14], sizes = [2, 7], strides = [1, 1]} : vector<2x28xf32> to vector<2x7xf32>
    %208 = math.tanh %207 : vector<2x7xf32>
    %209 = arith.mulf %205, %171 : vector<2x7xf32>
    %210 = arith.mulf %204, %208 : vector<2x7xf32>
    %211 = arith.addf %209, %210 : vector<2x7xf32>
    %212 = math.tanh %211 : vector<2x7xf32>
    %213 = arith.mulf %206, %212 : vector<2x7xf32>
    %214 = vector.extract_strided_slice %7 {offsets = [10, 0], sizes = [2, 28], strides = [1, 1]} : vector<16x28xf32> to vector<2x28xf32>
    %cst_55 = arith.constant dense<0.000000e+00> : vector<2x28xf32>
    %215 = tpu.matmul %196, %1, %cst_55 {dimension_numbers = #tpu.dot_dimension_numbers<[1], [0], [0], [1], [0, 0, 1, 1], [], []>} : vector<2x7xf32>, vector<7x28xf32>, vector<2x28xf32> -> vector<2x28xf32>
    %216 = arith.addf %214, %215 : vector<2x28xf32>
    %217 = vector.extract_strided_slice %12 {offsets = [4, 0], sizes = [2, 28], strides = [1, 1]} : vector<16x28xf32> to vector<2x28xf32>
    %cst_56 = arith.constant dense<0.000000e+00> : vector<2x28xf32>
    %218 = tpu.matmul %213, %2, %cst_56 {dimension_numbers = #tpu.dot_dimension_numbers<[1], [0], [0], [1], [0, 0, 1, 1], [], []>} : vector<2x7xf32>, vector<7x28xf32>, vector<2x28xf32> -> vector<2x28xf32>
    %219 = arith.addf %217, %218 : vector<2x28xf32>
    %cst_57 = arith.constant 5.000000e-01 : f32
    %220 = vector.broadcast %cst_57 : f32 to vector<2x28xf32>
    %221 = arith.mulf %220, %216 : vector<2x28xf32>
    %222 = math.tanh %221 : vector<2x28xf32>
    %cst_58 = arith.constant 1.000000e+00 : f32
    %223 = vector.broadcast %cst_58 : f32 to vector<2x28xf32>
    %224 = arith.addf %222, %223 : vector<2x28xf32>
    %cst_59 = arith.constant 5.000000e-01 : f32
    %225 = vector.broadcast %cst_59 : f32 to vector<2x28xf32>
    %226 = arith.mulf %225, %224 : vector<2x28xf32>
    %227 = vector.extract_strided_slice %226 {offsets = [0, 0], sizes = [2, 7], strides = [1, 1]} : vector<2x28xf32> to vector<2x7xf32>
    %228 = vector.extract_strided_slice %226 {offsets = [0, 7], sizes = [2, 7], strides = [1, 1]} : vector<2x28xf32> to vector<2x7xf32>
    %229 = vector.extract_strided_slice %226 {offsets = [0, 21], sizes = [2, 7], strides = [1, 1]} : vector<2x28xf32> to vector<2x7xf32>
    %230 = vector.extract_strided_slice %216 {offsets = [0, 14], sizes = [2, 7], strides = [1, 1]} : vector<2x28xf32> to vector<2x7xf32>
    %231 = math.tanh %230 : vector<2x7xf32>
    %232 = arith.mulf %228, %194 : vector<2x7xf32>
    %233 = arith.mulf %227, %231 : vector<2x7xf32>
    %234 = arith.addf %232, %233 : vector<2x7xf32>
    %235 = math.tanh %234 : vector<2x7xf32>
    %236 = arith.mulf %229, %235 : vector<2x7xf32>
    %cst_60 = arith.constant 5.000000e-01 : f32
    %237 = vector.broadcast %cst_60 : f32 to vector<2x28xf32>
    %238 = arith.mulf %237, %219 : vector<2x28xf32>
    %239 = math.tanh %238 : vector<2x28xf32>
    %cst_61 = arith.constant 1.000000e+00 : f32
    %240 = vector.broadcast %cst_61 : f32 to vector<2x28xf32>
    %241 = arith.addf %239, %240 : vector<2x28xf32>
    %cst_62 = arith.constant 5.000000e-01 : f32
    %242 = vector.broadcast %cst_62 : f32 to vector<2x28xf32>
    %243 = arith.mulf %242, %241 : vector<2x28xf32>
    %244 = vector.extract_strided_slice %243 {offsets = [0, 0], sizes = [2, 7], strides = [1, 1]} : vector<2x28xf32> to vector<2x7xf32>
    %245 = vector.extract_strided_slice %243 {offsets = [0, 7], sizes = [2, 7], strides = [1, 1]} : vector<2x28xf32> to vector<2x7xf32>
    %246 = vector.extract_strided_slice %243 {offsets = [0, 21], sizes = [2, 7], strides = [1, 1]} : vector<2x28xf32> to vector<2x7xf32>
    %247 = vector.extract_strided_slice %219 {offsets = [0, 14], sizes = [2, 7], strides = [1, 1]} : vector<2x28xf32> to vector<2x7xf32>
    %248 = math.tanh %247 : vector<2x7xf32>
    %249 = arith.mulf %245, %211 : vector<2x7xf32>
    %250 = arith.mulf %244, %248 : vector<2x7xf32>
    %251 = arith.addf %249, %250 : vector<2x7xf32>
    %252 = math.tanh %251 : vector<2x7xf32>
    %253 = arith.mulf %246, %252 : vector<2x7xf32>
    %254 = vector.extract_strided_slice %7 {offsets = [12, 0], sizes = [2, 28], strides = [1, 1]} : vector<16x28xf32> to vector<2x28xf32>
    %cst_63 = arith.constant dense<0.000000e+00> : vector<2x28xf32>
    %255 = tpu.matmul %236, %1, %cst_63 {dimension_numbers = #tpu.dot_dimension_numbers<[1], [0], [0], [1], [0, 0, 1, 1], [], []>} : vector<2x7xf32>, vector<7x28xf32>, vector<2x28xf32> -> vector<2x28xf32>
    %256 = arith.addf %254, %255 : vector<2x28xf32>
    %257 = vector.extract_strided_slice %12 {offsets = [2, 0], sizes = [2, 28], strides = [1, 1]} : vector<16x28xf32> to vector<2x28xf32>
    %cst_64 = arith.constant dense<0.000000e+00> : vector<2x28xf32>
    %258 = tpu.matmul %253, %2, %cst_64 {dimension_numbers = #tpu.dot_dimension_numbers<[1], [0], [0], [1], [0, 0, 1, 1], [], []>} : vector<2x7xf32>, vector<7x28xf32>, vector<2x28xf32> -> vector<2x28xf32>
    %259 = arith.addf %257, %258 : vector<2x28xf32>
    %cst_65 = arith.constant 5.000000e-01 : f32
    %260 = vector.broadcast %cst_65 : f32 to vector<2x28xf32>
    %261 = arith.mulf %260, %256 : vector<2x28xf32>
    %262 = math.tanh %261 : vector<2x28xf32>
    %cst_66 = arith.constant 1.000000e+00 : f32
    %263 = vector.broadcast %cst_66 : f32 to vector<2x28xf32>
    %264 = arith.addf %262, %263 : vector<2x28xf32>
    %cst_67 = arith.constant 5.000000e-01 : f32
    %265 = vector.broadcast %cst_67 : f32 to vector<2x28xf32>
    %266 = arith.mulf %265, %264 : vector<2x28xf32>
    %267 = vector.extract_strided_slice %266 {offsets = [0, 0], sizes = [2, 7], strides = [1, 1]} : vector<2x28xf32> to vector<2x7xf32>
    %268 = vector.extract_strided_slice %266 {offsets = [0, 7], sizes = [2, 7], strides = [1, 1]} : vector<2x28xf32> to vector<2x7xf32>
    %269 = vector.extract_strided_slice %266 {offsets = [0, 21], sizes = [2, 7], strides = [1, 1]} : vector<2x28xf32> to vector<2x7xf32>
    %270 = vector.extract_strided_slice %256 {offsets = [0, 14], sizes = [2, 7], strides = [1, 1]} : vector<2x28xf32> to vector<2x7xf32>
    %271 = math.tanh %270 : vector<2x7xf32>
    %272 = arith.mulf %268, %234 : vector<2x7xf32>
    %273 = arith.mulf %267, %271 : vector<2x7xf32>
    %274 = arith.addf %272, %273 : vector<2x7xf32>
    %275 = math.tanh %274 : vector<2x7xf32>
    %276 = arith.mulf %269, %275 : vector<2x7xf32>
    %cst_68 = arith.constant 5.000000e-01 : f32
    %277 = vector.broadcast %cst_68 : f32 to vector<2x28xf32>
    %278 = arith.mulf %277, %259 : vector<2x28xf32>
    %279 = math.tanh %278 : vector<2x28xf32>
    %cst_69 = arith.constant 1.000000e+00 : f32
    %280 = vector.broadcast %cst_69 : f32 to vector<2x28xf32>
    %281 = arith.addf %279, %280 : vector<2x28xf32>
    %cst_70 = arith.constant 5.000000e-01 : f32
    %282 = vector.broadcast %cst_70 : f32 to vector<2x28xf32>
    %283 = arith.mulf %282, %281 : vector<2x28xf32>
    %284 = vector.extract_strided_slice %283 {offsets = [0, 0], sizes = [2, 7], strides = [1, 1]} : vector<2x28xf32> to vector<2x7xf32>
    %285 = vector.extract_strided_slice %283 {offsets = [0, 7], sizes = [2, 7], strides = [1, 1]} : vector<2x28xf32> to vector<2x7xf32>
    %286 = vector.extract_strided_slice %283 {offsets = [0, 21], sizes = [2, 7], strides = [1, 1]} : vector<2x28xf32> to vector<2x7xf32>
    %287 = vector.extract_strided_slice %259 {offsets = [0, 14], sizes = [2, 7], strides = [1, 1]} : vector<2x28xf32> to vector<2x7xf32>
    %288 = math.tanh %287 : vector<2x7xf32>
    %289 = arith.mulf %285, %251 : vector<2x7xf32>
    %290 = arith.mulf %284, %288 : vector<2x7xf32>
    %291 = arith.addf %289, %290 : vector<2x7xf32>
    %292 = math.tanh %291 : vector<2x7xf32>
    %293 = arith.mulf %286, %292 : vector<2x7xf32>
    %294 = vector.extract_strided_slice %7 {offsets = [14, 0], sizes = [2, 28], strides = [1, 1]} : vector<16x28xf32> to vector<2x28xf32>
    %cst_71 = arith.constant dense<0.000000e+00> : vector<2x28xf32>
    %295 = tpu.matmul %276, %1, %cst_71 {dimension_numbers = #tpu.dot_dimension_numbers<[1], [0], [0], [1], [0, 0, 1, 1], [], []>} : vector<2x7xf32>, vector<7x28xf32>, vector<2x28xf32> -> vector<2x28xf32>
    %296 = arith.addf %294, %295 : vector<2x28xf32>
    %297 = vector.extract_strided_slice %12 {offsets = [0, 0], sizes = [2, 28], strides = [1, 1]} : vector<16x28xf32> to vector<2x28xf32>
    %cst_72 = arith.constant dense<0.000000e+00> : vector<2x28xf32>
    %298 = tpu.matmul %293, %2, %cst_72 {dimension_numbers = #tpu.dot_dimension_numbers<[1], [0], [0], [1], [0, 0, 1, 1], [], []>} : vector<2x7xf32>, vector<7x28xf32>, vector<2x28xf32> -> vector<2x28xf32>
    %299 = arith.addf %297, %298 : vector<2x28xf32>
    %cst_73 = arith.constant 5.000000e-01 : f32
    %300 = vector.broadcast %cst_73 : f32 to vector<2x28xf32>
    %301 = arith.mulf %300, %296 : vector<2x28xf32>
    %302 = math.tanh %301 : vector<2x28xf32>
    %cst_74 = arith.constant 1.000000e+00 : f32
    %303 = vector.broadcast %cst_74 : f32 to vector<2x28xf32>
    %304 = arith.addf %302, %303 : vector<2x28xf32>
    %cst_75 = arith.constant 5.000000e-01 : f32
    %305 = vector.broadcast %cst_75 : f32 to vector<2x28xf32>
    %306 = arith.mulf %305, %304 : vector<2x28xf32>
    %307 = vector.extract_strided_slice %306 {offsets = [0, 0], sizes = [2, 7], strides = [1, 1]} : vector<2x28xf32> to vector<2x7xf32>
    %308 = vector.extract_strided_slice %306 {offsets = [0, 7], sizes = [2, 7], strides = [1, 1]} : vector<2x28xf32> to vector<2x7xf32>
    %309 = vector.extract_strided_slice %306 {offsets = [0, 21], sizes = [2, 7], strides = [1, 1]} : vector<2x28xf32> to vector<2x7xf32>
    %310 = vector.extract_strided_slice %296 {offsets = [0, 14], sizes = [2, 7], strides = [1, 1]} : vector<2x28xf32> to vector<2x7xf32>
    %311 = math.tanh %310 : vector<2x7xf32>
    %312 = arith.mulf %308, %274 : vector<2x7xf32>
    %313 = arith.mulf %307, %311 : vector<2x7xf32>
    %314 = arith.addf %312, %313 : vector<2x7xf32>
    %315 = math.tanh %314 : vector<2x7xf32>
    %316 = arith.mulf %309, %315 : vector<2x7xf32>
    %cst_76 = arith.constant 5.000000e-01 : f32
    %317 = vector.broadcast %cst_76 : f32 to vector<2x28xf32>
    %318 = arith.mulf %317, %299 : vector<2x28xf32>
    %319 = math.tanh %318 : vector<2x28xf32>
    %cst_77 = arith.constant 1.000000e+00 : f32
    %320 = vector.broadcast %cst_77 : f32 to vector<2x28xf32>
    %321 = arith.addf %319, %320 : vector<2x28xf32>
    %cst_78 = arith.constant 5.000000e-01 : f32
    %322 = vector.broadcast %cst_78 : f32 to vector<2x28xf32>
    %323 = arith.mulf %322, %321 : vector<2x28xf32>
    %324 = vector.extract_strided_slice %323 {offsets = [0, 0], sizes = [2, 7], strides = [1, 1]} : vector<2x28xf32> to vector<2x7xf32>
    %325 = vector.extract_strided_slice %323 {offsets = [0, 7], sizes = [2, 7], strides = [1, 1]} : vector<2x28xf32> to vector<2x7xf32>
    %326 = vector.extract_strided_slice %323 {offsets = [0, 21], sizes = [2, 7], strides = [1, 1]} : vector<2x28xf32> to vector<2x7xf32>
    %327 = vector.extract_strided_slice %299 {offsets = [0, 14], sizes = [2, 7], strides = [1, 1]} : vector<2x28xf32> to vector<2x7xf32>
    %328 = math.tanh %327 : vector<2x7xf32>
    %329 = arith.mulf %325, %291 : vector<2x7xf32>
    %330 = arith.mulf %324, %328 : vector<2x7xf32>
    %331 = arith.addf %329, %330 : vector<2x7xf32>
    %332 = math.tanh %331 : vector<2x7xf32>
    %333 = arith.mulf %326, %332 : vector<2x7xf32>
    %334 = vector.extract_strided_slice %316 {offsets = [0, 0], sizes = [1, 7], strides = [1, 1]} : vector<2x7xf32> to vector<1x7xf32>
    %335 = vector.extract_strided_slice %316 {offsets = [1, 0], sizes = [1, 7], strides = [1, 1]} : vector<2x7xf32> to vector<1x7xf32>
    %336 = vector.extract_strided_slice %333 {offsets = [0, 0], sizes = [1, 7], strides = [1, 1]} : vector<2x7xf32> to vector<1x7xf32>
    %337 = vector.extract_strided_slice %333 {offsets = [1, 0], sizes = [1, 7], strides = [1, 1]} : vector<2x7xf32> to vector<1x7xf32>
    %338 = tpu.concatenate %334, %336 in 0 : vector<1x7xf32>, vector<1x7xf32> -> vector<2x7xf32>
    %339 = tpu.concatenate %335, %337 in 0 : vector<1x7xf32>, vector<1x7xf32> -> vector<2x7xf32>
    %340 = tpu.iota {dimensions = array<i32: 1>} : vector<2x8xi32>
    %cst_79 = arith.constant 0.000000e+00 : f32
    %341 = vector.broadcast %cst_79 : f32 to vector<2x8xf32>
    %342 = arith.mulf %36, %338 : vector<2x7xf32>
    %cst_80 = arith.constant dense<0.000000e+00> : vector<2xf32>
    %343 = vector.multi_reduction <add>, %342, %cst_80 [1] : vector<2x7xf32> to vector<2xf32>
    %344 = vector.shape_cast %343 : vector<2xf32> to vector<2x1xf32>
    %345 = arith.mulf %333, %339 : vector<2x7xf32>
    %cst_81 = arith.constant dense<0.000000e+00> : vector<2xf32>
    %346 = vector.multi_reduction <add>, %345, %cst_81 [1] : vector<2x7xf32> to vector<2xf32>
    %347 = vector.shape_cast %346 : vector<2xf32> to vector<2x1xf32>
    %348 = arith.addf %344, %347 : vector<2x1xf32>
    %c0_i32 = arith.constant 0 : i32
    %349 = vector.broadcast %c0_i32 : i32 to vector<2x8xi32>
    %350 = arith.cmpi eq, %340, %349 : vector<2x8xi32>
    %cst_82 = arith.constant 0.000000e+00 : f32
    %351 = vector.shape_cast %348 : vector<2x1xf32> to vector<2x1xf32>
    %352 = vector.broadcast %351 : vector<2x1xf32> to vector<2x8xf32>
    %353 = vector.broadcast %cst_82 : f32 to vector<2x8xf32>
    %354 = arith.select %350, %352, %353 : vector<2x8xi1>, vector<2x8xf32>
    %355 = arith.addf %341, %354 : vector<2x8xf32>
    %356 = arith.mulf %76, %338 : vector<2x7xf32>
    %cst_83 = arith.constant dense<0.000000e+00> : vector<2xf32>
    %357 = vector.multi_reduction <add>, %356, %cst_83 [1] : vector<2x7xf32> to vector<2xf32>
    %358 = vector.shape_cast %357 : vector<2xf32> to vector<2x1xf32>
    %359 = arith.mulf %293, %339 : vector<2x7xf32>
    %cst_84 = arith.constant dense<0.000000e+00> : vector<2xf32>
    %360 = vector.multi_reduction <add>, %359, %cst_84 [1] : vector<2x7xf32> to vector<2xf32>
    %361 = vector.shape_cast %360 : vector<2xf32> to vector<2x1xf32>
    %362 = arith.addf %358, %361 : vector<2x1xf32>
    %c1_i32 = arith.constant 1 : i32
    %363 = vector.broadcast %c1_i32 : i32 to vector<2x8xi32>
    %364 = arith.cmpi eq, %340, %363 : vector<2x8xi32>
    %cst_85 = arith.constant 0.000000e+00 : f32
    %365 = vector.shape_cast %362 : vector<2x1xf32> to vector<2x1xf32>
    %366 = vector.broadcast %365 : vector<2x1xf32> to vector<2x8xf32>
    %367 = vector.broadcast %cst_85 : f32 to vector<2x8xf32>
    %368 = arith.select %364, %366, %367 : vector<2x8xi1>, vector<2x8xf32>
    %369 = arith.addf %355, %368 : vector<2x8xf32>
    %370 = arith.mulf %116, %338 : vector<2x7xf32>
    %cst_86 = arith.constant dense<0.000000e+00> : vector<2xf32>
    %371 = vector.multi_reduction <add>, %370, %cst_86 [1] : vector<2x7xf32> to vector<2xf32>
    %372 = vector.shape_cast %371 : vector<2xf32> to vector<2x1xf32>
    %373 = arith.mulf %253, %339 : vector<2x7xf32>
    %cst_87 = arith.constant dense<0.000000e+00> : vector<2xf32>
    %374 = vector.multi_reduction <add>, %373, %cst_87 [1] : vector<2x7xf32> to vector<2xf32>
    %375 = vector.shape_cast %374 : vector<2xf32> to vector<2x1xf32>
    %376 = arith.addf %372, %375 : vector<2x1xf32>
    %c2_i32 = arith.constant 2 : i32
    %377 = vector.broadcast %c2_i32 : i32 to vector<2x8xi32>
    %378 = arith.cmpi eq, %340, %377 : vector<2x8xi32>
    %cst_88 = arith.constant 0.000000e+00 : f32
    %379 = vector.shape_cast %376 : vector<2x1xf32> to vector<2x1xf32>
    %380 = vector.broadcast %379 : vector<2x1xf32> to vector<2x8xf32>
    %381 = vector.broadcast %cst_88 : f32 to vector<2x8xf32>
    %382 = arith.select %378, %380, %381 : vector<2x8xi1>, vector<2x8xf32>
    %383 = arith.addf %369, %382 : vector<2x8xf32>
    %384 = arith.mulf %156, %338 : vector<2x7xf32>
    %cst_89 = arith.constant dense<0.000000e+00> : vector<2xf32>
    %385 = vector.multi_reduction <add>, %384, %cst_89 [1] : vector<2x7xf32> to vector<2xf32>
    %386 = vector.shape_cast %385 : vector<2xf32> to vector<2x1xf32>
    %387 = arith.mulf %213, %339 : vector<2x7xf32>
    %cst_90 = arith.constant dense<0.000000e+00> : vector<2xf32>
    %388 = vector.multi_reduction <add>, %387, %cst_90 [1] : vector<2x7xf32> to vector<2xf32>
    %389 = vector.shape_cast %388 : vector<2xf32> to vector<2x1xf32>
    %390 = arith.addf %386, %389 : vector<2x1xf32>
    %c3_i32 = arith.constant 3 : i32
    %391 = vector.broadcast %c3_i32 : i32 to vector<2x8xi32>
    %392 = arith.cmpi eq, %340, %391 : vector<2x8xi32>
    %cst_91 = arith.constant 0.000000e+00 : f32
    %393 = vector.shape_cast %390 : vector<2x1xf32> to vector<2x1xf32>
    %394 = vector.broadcast %393 : vector<2x1xf32> to vector<2x8xf32>
    %395 = vector.broadcast %cst_91 : f32 to vector<2x8xf32>
    %396 = arith.select %392, %394, %395 : vector<2x8xi1>, vector<2x8xf32>
    %397 = arith.addf %383, %396 : vector<2x8xf32>
    %398 = arith.mulf %196, %338 : vector<2x7xf32>
    %cst_92 = arith.constant dense<0.000000e+00> : vector<2xf32>
    %399 = vector.multi_reduction <add>, %398, %cst_92 [1] : vector<2x7xf32> to vector<2xf32>
    %400 = vector.shape_cast %399 : vector<2xf32> to vector<2x1xf32>
    %401 = arith.mulf %173, %339 : vector<2x7xf32>
    %cst_93 = arith.constant dense<0.000000e+00> : vector<2xf32>
    %402 = vector.multi_reduction <add>, %401, %cst_93 [1] : vector<2x7xf32> to vector<2xf32>
    %403 = vector.shape_cast %402 : vector<2xf32> to vector<2x1xf32>
    %404 = arith.addf %400, %403 : vector<2x1xf32>
    %c4_i32 = arith.constant 4 : i32
    %405 = vector.broadcast %c4_i32 : i32 to vector<2x8xi32>
    %406 = arith.cmpi eq, %340, %405 : vector<2x8xi32>
    %cst_94 = arith.constant 0.000000e+00 : f32
    %407 = vector.shape_cast %404 : vector<2x1xf32> to vector<2x1xf32>
    %408 = vector.broadcast %407 : vector<2x1xf32> to vector<2x8xf32>
    %409 = vector.broadcast %cst_94 : f32 to vector<2x8xf32>
    %410 = arith.select %406, %408, %409 : vector<2x8xi1>, vector<2x8xf32>
    %411 = arith.addf %397, %410 : vector<2x8xf32>
    %412 = arith.mulf %236, %338 : vector<2x7xf32>
    %cst_95 = arith.constant dense<0.000000e+00> : vector<2xf32>
    %413 = vector.multi_reduction <add>, %412, %cst_95 [1] : vector<2x7xf32> to vector<2xf32>
    %414 = vector.shape_cast %413 : vector<2xf32> to vector<2x1xf32>
    %415 = arith.mulf %133, %339 : vector<2x7xf32>
    %cst_96 = arith.constant dense<0.000000e+00> : vector<2xf32>
    %416 = vector.multi_reduction <add>, %415, %cst_96 [1] : vector<2x7xf32> to vector<2xf32>
    %417 = vector.shape_cast %416 : vector<2xf32> to vector<2x1xf32>
    %418 = arith.addf %414, %417 : vector<2x1xf32>
    %c5_i32 = arith.constant 5 : i32
    %419 = vector.broadcast %c5_i32 : i32 to vector<2x8xi32>
    %420 = arith.cmpi eq, %340, %419 : vector<2x8xi32>
    %cst_97 = arith.constant 0.000000e+00 : f32
    %421 = vector.shape_cast %418 : vector<2x1xf32> to vector<2x1xf32>
    %422 = vector.broadcast %421 : vector<2x1xf32> to vector<2x8xf32>
    %423 = vector.broadcast %cst_97 : f32 to vector<2x8xf32>
    %424 = arith.select %420, %422, %423 : vector<2x8xi1>, vector<2x8xf32>
    %425 = arith.addf %411, %424 : vector<2x8xf32>
    %426 = arith.mulf %276, %338 : vector<2x7xf32>
    %cst_98 = arith.constant dense<0.000000e+00> : vector<2xf32>
    %427 = vector.multi_reduction <add>, %426, %cst_98 [1] : vector<2x7xf32> to vector<2xf32>
    %428 = vector.shape_cast %427 : vector<2xf32> to vector<2x1xf32>
    %429 = arith.mulf %93, %339 : vector<2x7xf32>
    %cst_99 = arith.constant dense<0.000000e+00> : vector<2xf32>
    %430 = vector.multi_reduction <add>, %429, %cst_99 [1] : vector<2x7xf32> to vector<2xf32>
    %431 = vector.shape_cast %430 : vector<2xf32> to vector<2x1xf32>
    %432 = arith.addf %428, %431 : vector<2x1xf32>
    %c6_i32 = arith.constant 6 : i32
    %433 = vector.broadcast %c6_i32 : i32 to vector<2x8xi32>
    %434 = arith.cmpi eq, %340, %433 : vector<2x8xi32>
    %cst_100 = arith.constant 0.000000e+00 : f32
    %435 = vector.shape_cast %432 : vector<2x1xf32> to vector<2x1xf32>
    %436 = vector.broadcast %435 : vector<2x1xf32> to vector<2x8xf32>
    %437 = vector.broadcast %cst_100 : f32 to vector<2x8xf32>
    %438 = arith.select %434, %436, %437 : vector<2x8xi1>, vector<2x8xf32>
    %439 = arith.addf %425, %438 : vector<2x8xf32>
    %440 = arith.mulf %316, %338 : vector<2x7xf32>
    %cst_101 = arith.constant dense<0.000000e+00> : vector<2xf32>
    %441 = vector.multi_reduction <add>, %440, %cst_101 [1] : vector<2x7xf32> to vector<2xf32>
    %442 = vector.shape_cast %441 : vector<2xf32> to vector<2x1xf32>
    %443 = arith.mulf %53, %339 : vector<2x7xf32>
    %cst_102 = arith.constant dense<0.000000e+00> : vector<2xf32>
    %444 = vector.multi_reduction <add>, %443, %cst_102 [1] : vector<2x7xf32> to vector<2xf32>
    %445 = vector.shape_cast %444 : vector<2xf32> to vector<2x1xf32>
    %446 = arith.addf %442, %445 : vector<2x1xf32>
    %c7_i32 = arith.constant 7 : i32
    %447 = vector.broadcast %c7_i32 : i32 to vector<2x8xi32>
    %448 = arith.cmpi eq, %340, %447 : vector<2x8xi32>
    %cst_103 = arith.constant 0.000000e+00 : f32
    %449 = vector.shape_cast %446 : vector<2x1xf32> to vector<2x1xf32>
    %450 = vector.broadcast %449 : vector<2x1xf32> to vector<2x8xf32>
    %451 = vector.broadcast %cst_103 : f32 to vector<2x8xf32>
    %452 = arith.select %448, %450, %451 : vector<2x8xi1>, vector<2x8xf32>
    %453 = arith.addf %439, %452 : vector<2x8xf32>
    %cst_104 = arith.constant dense<0xFF800000> : vector<2xf32>
    %454 = vector.multi_reduction <maximumf>, %453, %cst_104 [1] : vector<2x8xf32> to vector<2xf32>
    %455 = vector.shape_cast %454 : vector<2xf32> to vector<2x1xf32>
    %456 = vector.broadcast %455 : vector<2x1xf32> to vector<2x8xf32>
    %457 = arith.subf %453, %456 : vector<2x8xf32>
    %458 = math.exp %457 : vector<2x8xf32>
    %cst_105 = arith.constant dense<0.000000e+00> : vector<2xf32>
    %459 = vector.multi_reduction <add>, %458, %cst_105 [1] : vector<2x8xf32> to vector<2xf32>
    %460 = vector.shape_cast %459 : vector<2xf32> to vector<2x1xf32>
    %461 = tpu.reciprocal %460 : vector<2x1xf32> -> vector<2x1xf32>
    %462 = vector.broadcast %461 : vector<2x1xf32> to vector<2x8xf32>
    %463 = arith.mulf %458, %462 : vector<2x8xf32>
    %cst_106 = arith.constant 0.000000e+00 : f32
    %464 = vector.broadcast %cst_106 : f32 to vector<2x7xf32>
    %cst_107 = arith.constant 0.000000e+00 : f32
    %465 = vector.broadcast %cst_107 : f32 to vector<2x7xf32>
    %466 = vector.extract_strided_slice %463 {offsets = [0, 0], sizes = [2, 1], strides = [1, 1]} : vector<2x8xf32> to vector<2x1xf32>
    %467 = vector.broadcast %466 : vector<2x1xf32> to vector<2x7xf32>
    %468 = arith.mulf %36, %467 : vector<2x7xf32>
    %469 = arith.addf %464, %468 : vector<2x7xf32>
    %470 = vector.broadcast %466 : vector<2x1xf32> to vector<2x7xf32>
    %471 = arith.mulf %333, %470 : vector<2x7xf32>
    %472 = arith.addf %465, %471 : vector<2x7xf32>
    %473 = vector.extract_strided_slice %463 {offsets = [0, 1], sizes = [2, 1], strides = [1, 1]} : vector<2x8xf32> to vector<2x1xf32>
    %474 = vector.broadcast %473 : vector<2x1xf32> to vector<2x7xf32>
    %475 = arith.mulf %76, %474 : vector<2x7xf32>
    %476 = arith.addf %469, %475 : vector<2x7xf32>
    %477 = vector.broadcast %473 : vector<2x1xf32> to vector<2x7xf32>
    %478 = arith.mulf %293, %477 : vector<2x7xf32>
    %479 = arith.addf %472, %478 : vector<2x7xf32>
    %480 = vector.extract_strided_slice %463 {offsets = [0, 2], sizes = [2, 1], strides = [1, 1]} : vector<2x8xf32> to vector<2x1xf32>
    %481 = vector.broadcast %480 : vector<2x1xf32> to vector<2x7xf32>
    %482 = arith.mulf %116, %481 : vector<2x7xf32>
    %483 = arith.addf %476, %482 : vector<2x7xf32>
    %484 = vector.broadcast %480 : vector<2x1xf32> to vector<2x7xf32>
    %485 = arith.mulf %253, %484 : vector<2x7xf32>
    %486 = arith.addf %479, %485 : vector<2x7xf32>
    %487 = vector.extract_strided_slice %463 {offsets = [0, 3], sizes = [2, 1], strides = [1, 1]} : vector<2x8xf32> to vector<2x1xf32>
    %488 = vector.broadcast %487 : vector<2x1xf32> to vector<2x7xf32>
    %489 = arith.mulf %156, %488 : vector<2x7xf32>
    %490 = arith.addf %483, %489 : vector<2x7xf32>
    %491 = vector.broadcast %487 : vector<2x1xf32> to vector<2x7xf32>
    %492 = arith.mulf %213, %491 : vector<2x7xf32>
    %493 = arith.addf %486, %492 : vector<2x7xf32>
    %494 = vector.extract_strided_slice %463 {offsets = [0, 4], sizes = [2, 1], strides = [1, 1]} : vector<2x8xf32> to vector<2x1xf32>
    %495 = vector.broadcast %494 : vector<2x1xf32> to vector<2x7xf32>
    %496 = arith.mulf %196, %495 : vector<2x7xf32>
    %497 = arith.addf %490, %496 : vector<2x7xf32>
    %498 = vector.broadcast %494 : vector<2x1xf32> to vector<2x7xf32>
    %499 = arith.mulf %173, %498 : vector<2x7xf32>
    %500 = arith.addf %493, %499 : vector<2x7xf32>
    %501 = vector.extract_strided_slice %463 {offsets = [0, 5], sizes = [2, 1], strides = [1, 1]} : vector<2x8xf32> to vector<2x1xf32>
    %502 = vector.broadcast %501 : vector<2x1xf32> to vector<2x7xf32>
    %503 = arith.mulf %236, %502 : vector<2x7xf32>
    %504 = arith.addf %497, %503 : vector<2x7xf32>
    %505 = vector.broadcast %501 : vector<2x1xf32> to vector<2x7xf32>
    %506 = arith.mulf %133, %505 : vector<2x7xf32>
    %507 = arith.addf %500, %506 : vector<2x7xf32>
    %508 = vector.extract_strided_slice %463 {offsets = [0, 6], sizes = [2, 1], strides = [1, 1]} : vector<2x8xf32> to vector<2x1xf32>
    %509 = vector.broadcast %508 : vector<2x1xf32> to vector<2x7xf32>
    %510 = arith.mulf %276, %509 : vector<2x7xf32>
    %511 = arith.addf %504, %510 : vector<2x7xf32>
    %512 = vector.broadcast %508 : vector<2x1xf32> to vector<2x7xf32>
    %513 = arith.mulf %93, %512 : vector<2x7xf32>
    %514 = arith.addf %507, %513 : vector<2x7xf32>
    %515 = vector.extract_strided_slice %463 {offsets = [0, 7], sizes = [2, 1], strides = [1, 1]} : vector<2x8xf32> to vector<2x1xf32>
    %516 = vector.broadcast %515 : vector<2x1xf32> to vector<2x7xf32>
    %517 = arith.mulf %316, %516 : vector<2x7xf32>
    %518 = arith.addf %511, %517 : vector<2x7xf32>
    %519 = vector.broadcast %515 : vector<2x1xf32> to vector<2x7xf32>
    %520 = arith.mulf %53, %519 : vector<2x7xf32>
    %521 = arith.addf %514, %520 : vector<2x7xf32>
    %c0_108 = arith.constant 0 : index
    %c0_109 = arith.constant 0 : index
    %522 = vector.load %arg7[%c0_108, %c0_109] : memref<7x2xf32, #tpu.memory_space<vmem>>, vector<7x2xf32>
    %cst_110 = arith.constant dense<0.000000e+00> : vector<2x2xf32>
    %523 = tpu.matmul %518, %522, %cst_110 {dimension_numbers = #tpu.dot_dimension_numbers<[1], [0], [0], [1], [0, 0, 1, 1], [], []>} : vector<2x7xf32>, vector<7x2xf32>, vector<2x2xf32> -> vector<2x2xf32>
    %c0_111 = arith.constant 0 : index
    %c0_112 = arith.constant 0 : index
    %524 = vector.load %arg8[%c0_111, %c0_112] : memref<7x2xf32, #tpu.memory_space<vmem>>, vector<7x2xf32>
    %cst_113 = arith.constant dense<0.000000e+00> : vector<2x2xf32>
    %525 = tpu.matmul %521, %524, %cst_113 {dimension_numbers = #tpu.dot_dimension_numbers<[1], [0], [0], [1], [0, 0, 1, 1], [], []>} : vector<2x7xf32>, vector<7x2xf32>, vector<2x2xf32> -> vector<2x2xf32>
    %526 = arith.addf %523, %525 : vector<2x2xf32>
    %c0_114 = arith.constant 0 : index
    %c0_115 = arith.constant 0 : index
    %527 = vector.load %arg9[%c0_114, %c0_115] : memref<1x2xf32, #tpu.memory_space<vmem>>, vector<1x2xf32>
    %528 = vector.broadcast %527 : vector<1x2xf32> to vector<2x2xf32>
    %529 = arith.addf %526, %528 : vector<2x2xf32>
    %c0_116 = arith.constant 0 : index
    %c0_117 = arith.constant 0 : index
    %530 = vector.load %arg10[%c0_116, %c0_117] : memref<2x2xf32, #tpu.memory_space<vmem>>, vector<2x2xf32>
    tpu.vector_store %arg10[%c0_116, %c0_117], %529 {strides = array<i32>} : memref<2x2xf32, #tpu.memory_space<vmem>>, vector<2x2xf32>,
    %c0_118 = arith.constant 0 : index
    %c0_119 = arith.constant 0 : index
    %531 = vector.load %arg11[%c0_118, %c0_119] : memref<2x8xf32, #tpu.memory_space<vmem>>, vector<2x8xf32>
    tpu.vector_store %arg11[%c0_118, %c0_119], %463 {strides = array<i32>} : memref<2x8xf32, #tpu.memory_space<vmem>>, vector<2x8xf32>,
    return
  }
}

</mosaic_0001>

<bundles_post_ra>
// kernel: tpu_custom_call.1
= control target key start
LH: loop header
LB: loop body
LE: loop exit
PB: predicated region body
PF: predicated region fallthrough
CT: control target
= control target key end

     0   :  { %17 = vsyncpa [#allocation3], 0  ;;  %vm117_vm0 = vcmask 1046528   ;;  %vm55_vm1 = vcmask 1042432   ;;  %vm48_vm2 = vcmask 23552   ;;  %v1629_v4 = vmov 0.0   ;;  %s2013_s0 = inlined_call_operand.vmem [shape: f32[16,3], index: 0, kind: input, shape index: {}]   ;;  %s2014_s1 = inlined_call_operand.vmem [shape: f32[3,28], index: 1, kind: input, shape index: {}]   ;;  %s2015_s2 = inlined_call_operand.vmem [shape: f32[7,28], index: 2, kind: input, shape index: {}]   ;;  %s2016_s3 = inlined_call_operand.vmem [shape: f32[1,28], index: 3, kind: input, shape index: {}]   ;;  %s2017_s4 = inlined_call_operand.vmem [shape: f32[3,28], index: 4, kind: input, shape index: {}]   ;;  %s2018_s5 = inlined_call_operand.vmem [shape: f32[7,28], index: 5, kind: input, shape index: {}]   ;;  %s2019_s6 = inlined_call_operand.vmem [shape: f32[1,28], index: 6, kind: input, shape index: {}]   ;;  %s2020_s7 = inlined_call_operand.vmem [shape: f32[7,2], index: 7, kind: input, shape index: {}]   ;;  %s2021_s8 = inlined_call_operand.vmem [shape: f32[7,2], index: 8, kind: input, shape index: {}]   ;;  %s2022_s9 = inlined_call_operand.vmem [shape: f32[1,2], index: 9, kind: input, shape index: {}]   ;;  %s2023_s10 = inlined_call_operand.hbm [shape: f32[2,2], index: 10, kind: output, shape index: {0}]   ;;  %s2024_s11 = inlined_call_operand.hbm [shape: f32[2,8], index: 11, kind: output, shape index: {1}]  }
   0x1   :  { %v1707_v0 = vld [vmem:[%s2015_s2] sm:$0x7f] }
   0x2   :  { %v43_v1 = vld [vmem:[%s2014_s1] sm:$0x7]  ;;  %1416 = vmatpush.msk.msra.mxu2 %vm117_vm0, %v1707_v0 }
   0x3   :  { %v82_v2 = vld [vmem:[%s2017_s4] sm:$0x7]  ;;  %137 = vmatmul.f32.vlgmr.msra.gmra.mxu2 %v1629_v4  ;;  %1410 = vmatpush.msk.msra.mxu0 %vm55_vm1, %v43_v1 }
   0x4   :  { %v39_v3 = vld [vmem:[%s2013_s0] sm:$0xff]  ;;  %1413 = vmatpush.msk.msra.mxu1 %vm55_vm1, %v82_v2 }
   0x5   :  { %v1723_v5 = vld [vmem:[%s2018_s5] sm:$0x7f]  ;;  %1411 = vmatmul.msk.f32.vlgmr.msra.gmra.mxu0 %vm48_vm2, %v39_v3 }
   0x6   :  { %18 = vsyncpa [#allocation5], 0  ;;  %1414 = vmatmul.msk.f32.vlgmr.msra.gmra.mxu1 %vm48_vm2, %v39_v3  ;;  %1417 = vmatpush.msk.msra.mxu3 %vm117_vm0, %v1723_v5  ;;  %v40_v6 = vld [vmem:[%s2013_s0 + $0x8] sm:$0xff]  ;;  %v1753_v7 = vld [vmem:[%s2016_s3] ss:$0 sm:$0xff]  ;;  %s1630_s0 = smov 114  }
   0x7   :  { %161 = vmatmul.f32.vlgmr.msra.gmra.mxu3 %v1629_v4  ;;  %1418 = vmatpush.msk.msrb.mxu2 %vm117_vm0, %v1707_v0  ;;  %v1475_v8 = vld [vmem:[%s2019_s6] ss:$0 sm:$0xff]  ;;  %s1631_s3 = smov 7   ;;  %s1632_s6 = smov 14   ;;  %vm113_vm3 = vcmask 56320   ;;  %vm977_vm4 = vcmask 1040384  }
   0x8   :  { %1420 = vmatpush.msk.msrb.mxu3 %vm117_vm0, %v1723_v5  ;;  %1422 = vmatpush.msk.msrb.mxu0 %vm117_vm0, %v1707_v0  ;;  %s1633_s29 = smov 107   ;;  %vm989_vm5 = vcmask 50176   ;;  %vm1013_vm6 = vcmask 52226   ;;  %vm1042_vm7 = vcmask 54276   ;;  %vm1070_vm8 = vcmask 56326   ;;  %s1396_s17 = sshll.u32 %s2024_s11, 4  ;;  %s1397_s17 = int_to_ptr.hbm [resolvable:$true] %s1396_s17 }
   0x9   :  { %1424 = vmatpush.msk.msrb.mxu1 %vm117_vm0, %v1723_v5  ;;  %1426 = vmatpush.msk.msra.mxu2 %vm117_vm0, %v1707_v0  ;;  %s1643_s20 = smov [#allocation2]   ;;  %s1385_s24 = sshll.u32 %s2023_s10, 4  ;;  %s1386_s24 = int_to_ptr.hbm [resolvable:$true] %s1385_s24 }
   0xa   :  { %1428 = vmatpush.msk.msra.mxu3 %vm117_vm0, %v1723_v5  ;;  %1430 = vmatpush.msk.msra.mxu0 %vm117_vm0, %v1707_v0  ;;  %s1383_s21 = sshll.u32 %s1643_s20, 4  ;;  %s1384_s21 = int_to_ptr.vmem [resolvable:$true] %s1383_s21 }
   0xb   :  { %1432 = vmatpush.msk.msra.mxu1 %vm117_vm0, %v1723_v5 }
   0xd   :  { %1412 = vmatmul.msk.f32.gmra.mxu0 %vm48_vm2, %v40_v6 }
   0xe   :  { %1415 = vmatmul.msk.f32.gmra.mxu1 %vm48_vm2, %v40_v6  ;;  %vm1180_vm2 = vcmask 58368  }
  0x82   :  { %v76_v9 = vpop.f32.mrf.mxu0 }
  0x83   :  { %v107_v10 = vpop.f32.mrf.mxu1  ;;  %v1759_v11 = vadd.f32 %v1753_v7, %v76_v9 }
  0x84   :  { %v1761_v12 = vadd.f32 %v1475_v8, %v107_v10 }
  0x86   :  { %v138_v13 = vpop.f32.mrf.mxu2 }
  0x87   :  { %v141_v14 = vadd.f32 %v138_v13, %v1759_v11 }
  0x89   :  { %1477 = vtanh.f32 %v141_v14  ;;  %v169_v22 = vmul.f32 0.5, %v141_v14 }
  0x8a   :  { %v162_v15 = vpop.f32.mrf.mxu3 }
  0x8b   :  { %v110_v16 = vpop.f32.mrf.mxu1  ;;  %v166_v17 = vrot.slane %v162_v15, 2 }
  0x8c   :  { %v1764_v18 = vadd.f32 %v1475_v8, %v110_v16 }
  0x8e   :  { %v168_v19 = vadd.f32 %v166_v17, %v1764_v18 }
  0x8f   :  { %v1478_v20 = vpop.eup %1477 }
  0x90   :  { %1479 = vtanh.f32 %v168_v19  ;;  %176 = vrot.lane.b32.xlu0 %v1478_v20, %s1630_s0  ;;  %v191_v23 = vmul.f32 0.5, %v168_v19 }
  0x91   :  { %1481 = vtanh.f32 %v169_v22 }
  0x92   :  { %1483 = vtanh.f32 %v191_v23 }
  0x96   :  { %v1480_v21 = vpop.eup %1479 }
  0x97   :  { %v1482_v24 = vpop.eup %1481 }
  0x98   :  { %198 = vrot.lane.b32.xlu0 %v1480_v21, %s1630_s0  ;;  %v171_v25 = vadd.f32 1.0, %v1482_v24  ;;  %v1484_v27 = vpop.eup %1483 }
  0x99   :  { %v193_v30 = vadd.f32 1.0, %v1484_v27 }
  0x9a   :  { %v172_v26 = vmul.f32 0.5, %v171_v25 }
  0x9b   :  { %v194_v31 = vmul.f32 0.5, %v193_v30 }
  0x9c   :  { %v174_v34 = vmul.f32 0.0, %v172_v26 }
  0x9d   :  { %v196_v37 = vmul.f32 0.0, %v194_v31 }
 0x102   :  { %v177_v28 = vpop.permute.xlu0 %176 }
 0x103   :  { %v179_v29 = vmul.f32 %v177_v28, %v172_v26 }
 0x105   :  { %181 = vrot.lane.b32.xlu1 %v179_v29, %s1631_s3  ;;  %v1809_v29 = vpop.f32.mrf.mxu0 }
 0x10a   :  { %v199_v32 = vpop.permute.xlu0 %198 }
 0x10b   :  { %v201_v33 = vmul.f32 %v199_v32, %v194_v31 }
 0x10d   :  { %203 = vrot.lane.b32.xlu1 %v201_v33, %s1631_s3 }
 0x177   :  { %v182_v35 = vpop.permute.xlu1 %181 }
 0x178   :  { %v184_v36 = vadd.f32 %v182_v35, %v174_v34 }
 0x17a   :  { %1485 = vtanh.f32 %v184_v36  ;;  %v278_v8 = vrot.slane %v184_v36, 6 }
 0x17f   :  { %v204_v38 = vpop.permute.xlu1 %203 }
 0x180   :  { %v1486_v39 = vpop.eup %1485  ;;  %v206_v40 = vadd.f32 %v204_v38, %v196_v37 }
 0x181   :  { %187 = vrot.lane.b32.xlu2 %v1486_v39, %s1632_s6 }
 0x182   :  { %1487 = vtanh.f32 %v206_v40  ;;  %v303_v14 = vrot.slane %v206_v40, 2 }
 0x188   :  { %v1488_v41 = vpop.eup %1487 }
 0x189   :  { %209 = vrot.lane.b32.xlu2 %v1488_v41, %s1632_s6 }
 0x1db   :  { %v188_v42 = vpop.permute.xlu2 %187 }
 0x1dc   :  { %v1773_v43 = vmul.f32 %v188_v42, %v172_v26 }
 0x1de   :  { %214 = vrot.lane.b32.xlu0 %v1773_v43, %s1633_s29 }
 0x1e3   :  { %v210_v44 = vpop.permute.xlu2 %209 }
 0x1e4   :  { %v1777_v45 = vmul.f32 %v210_v44, %v194_v31 }
 0x1e6   :  { %v243_v46 = vrot.slane %v1777_v45, 6 }
 0x1e8   :  { %244 = vrot.lane.b32.xlu1 %v243_v46, %s1633_s29 }
 0x250   :  { %v215_v47 = vpop.permute.xlu0 %214 }
 0x251   :  { %1419 = vmatmul.msk.f32.vlgmr.msrb.gmra.mxu2 %vm113_vm3, %v215_v47 }
 0x252   :  { %1434 = vmatpush.msk.msrb.mxu2 %vm117_vm0, %v1707_v0 }
 0x25a   :  { %v245_v48 = vpop.permute.xlu1 %244 }
 0x25b   :  { %1421 = vmatmul.msk.f32.vlgmr.msrb.gmra.mxu3 %vm113_vm3, %v245_v48 }
 0x25c   :  { %1436 = vmatpush.msk.msrb.mxu3 %vm117_vm0, %v1723_v5 }
 0x2d4   :  { %v235_v49 = vpop.f32.mrf.mxu2 }
 0x2d5   :  { %v239_v50 = vrot.slane %v235_v49, 6 }
 0x2d7   :  { %v241_v51 = vadd.f32 %v239_v50, %v1759_v11 }
 0x2d9   :  { %1489 = vtanh.f32 %v241_v51  ;;  %v272_v57 = vmul.f32 0.5, %v241_v51 }
 0x2de   :  { %v265_v52 = vpop.f32.mrf.mxu3 }
 0x2df   :  { %v1490_v53 = vpop.eup %1489  ;;  %v269_v54 = vrot.slane %v265_v52, 4 }
 0x2e0   :  { %282 = vrot.lane.b32.xlu2 %v1490_v53, %s1630_s0 }
 0x2e1   :  { %v271_v55 = vadd.f32 %v269_v54, %v1764_v18 }
 0x2e3   :  { %1491 = vtanh.f32 %v271_v55  ;;  %v297_v63 = vmul.f32 0.5, %v271_v55 }
 0x2e4   :  { %1493 = vtanh.f32 %v272_v57 }
 0x2e5   :  { %1495 = vtanh.f32 %v297_v63 }
 0x2e9   :  { %v1492_v56 = vpop.eup %1491 }
 0x2ea   :  { %307 = vrot.lane.b32.xlu0 %v1492_v56, %s1630_s0  ;;  %v1494_v58 = vpop.eup %1493 }
 0x2eb   :  { %v274_v59 = vadd.f32 1.0, %v1494_v58  ;;  %v1496_v1 = vpop.eup %1495 }
 0x2ec   :  { %v299_v2 = vadd.f32 1.0, %v1496_v1 }
 0x2ed   :  { %v275_v60 = vmul.f32 0.5, %v274_v59 }
 0x2ee   :  { %v300_v3 = vmul.f32 0.5, %v299_v2 }
 0x2ef   :  { %v280_v9 = vmul.f32 %v278_v8, %v275_v60 }
 0x2f0   :  { %v305_v16 = vmul.f32 %v303_v14, %v300_v3 }
 0x33a   :  { %v283_v61 = vpop.permute.xlu2 %282 }
 0x33b   :  { %v285_v62 = vmul.f32 %v283_v61, %v275_v60 }
 0x33d   :  { %287 = vrot.lane.b32.xlu1 %v285_v62, %s1631_s3 }
 0x35c   :  { %v308_v4 = vpop.permute.xlu0 %307 }
 0x35d   :  { %v310_v6 = vmul.f32 %v308_v4, %v300_v3 }
 0x35f   :  { %312 = vrot.lane.b32.xlu2 %v310_v6, %s1631_s3 }
 0x3af   :  { %v288_v10 = vpop.permute.xlu1 %287 }
 0x3b0   :  { %v290_v13 = vadd.f32 %v288_v10, %v280_v9 }
 0x3b2   :  { %1497 = vtanh.f32 %v290_v13  ;;  %v388_v52 = vrot.slane %v290_v13, 6 }
 0x3b8   :  { %v1498_v15 = vpop.eup %1497 }
 0x3b9   :  { %293 = vrot.lane.b32.xlu0 %v1498_v15, %s1632_s6  ;;  %v313_v17 = vpop.permute.xlu2 %312 }
 0x3ba   :  { %v315_v19 = vadd.f32 %v313_v17, %v305_v16 }
 0x3bc   :  { %1499 = vtanh.f32 %v315_v19  ;;  %v413_v56 = vrot.slane %v315_v19, 2 }
 0x3c2   :  { %v1500_v20 = vpop.eup %1499 }
 0x3c3   :  { %318 = vrot.lane.b32.xlu1 %v1500_v20, %s1632_s6 }
 0x42b   :  { %v294_v21 = vpop.permute.xlu0 %293 }
 0x42c   :  { %v1795_v22 = vmul.f32 %v294_v21, %v275_v60 }
 0x42e   :  { %v323_v23 = vrot.slane %v1795_v22, 2 }
 0x430   :  { %324 = vrot.lane.b32.xlu2 %v323_v23, %s1633_s29 }
 0x435   :  { %v319_v24 = vpop.permute.xlu1 %318 }
 0x436   :  { %v1799_v25 = vmul.f32 %v319_v24, %v300_v3 }
 0x438   :  { %v353_v26 = vrot.slane %v1799_v25, 4 }
 0x43a   :  { %354 = vrot.lane.b32.xlu0 %v353_v26, %s1633_s29 }
 0x48a   :  { %v325_v27 = vpop.permute.xlu2 %324 }
 0x48b   :  { %1423 = vmatmul.msk.f32.vlgmr.msrb.gmra.mxu0 %vm113_vm3, %v325_v27 }
 0x48c   :  { %1438 = vmatpush.msk.msrb.mxu0 %vm117_vm0, %v1707_v0 }
 0x4ac   :  { %v355_v28 = vpop.permute.xlu0 %354 }
 0x4ad   :  { %1425 = vmatmul.msk.f32.vlgmr.msrb.gmra.mxu1 %vm113_vm3, %v355_v28 }
 0x4ae   :  { %1440 = vmatpush.msk.msrb.mxu1 %vm117_vm0, %v1723_v5 }
 0x508   :  { %v345_v30 = vpop.f32.mrf.mxu0 }
 0x509   :  { %v349_v31 = vrot.slane %v345_v30, 4 }
 0x50b   :  { %v351_v32 = vadd.f32 %v349_v31, %v1759_v11 }
 0x50d   :  { %1501 = vtanh.f32 %v351_v32  ;;  %v382_v38 = vmul.f32 0.5, %v351_v32 }
 0x513   :  { %v1502_v33 = vpop.eup %1501 }
 0x514   :  { %392 = vrot.lane.b32.xlu1 %v1502_v33, %s1630_s0 }
 0x52a   :  { %v375_v34 = vpop.f32.mrf.mxu1 }
 0x52b   :  { %v379_v35 = vrot.slane %v375_v34, 6 }
 0x52d   :  { %v381_v36 = vadd.f32 %v379_v35, %v1764_v18 }
 0x52f   :  { %1503 = vtanh.f32 %v381_v36  ;;  %v407_v40 = vmul.f32 0.5, %v381_v36 }
 0x530   :  { %1505 = vtanh.f32 %v382_v38 }
 0x531   :  { %1507 = vtanh.f32 %v407_v40 }
 0x535   :  { %v1504_v37 = vpop.eup %1503 }
 0x536   :  { %417 = vrot.lane.b32.xlu2 %v1504_v37, %s1630_s0  ;;  %v1506_v39 = vpop.eup %1505 }
 0x537   :  { %v384_v41 = vadd.f32 1.0, %v1506_v39  ;;  %v1508_v47 = vpop.eup %1507 }
 0x538   :  { %v409_v48 = vadd.f32 1.0, %v1508_v47 }
 0x539   :  { %v385_v42 = vmul.f32 0.5, %v384_v41 }
 0x53a   :  { %v410_v49 = vmul.f32 0.5, %v409_v48 }
 0x53b   :  { %v390_v53 = vmul.f32 %v388_v52, %v385_v42 }
 0x53c   :  { %v415_v58 = vmul.f32 %v413_v56, %v410_v49 }
 0x586   :  { %v393_v44 = vpop.permute.xlu1 %392 }
 0x587   :  { %v395_v46 = vmul.f32 %v393_v44, %v385_v42 }
 0x589   :  { %397 = vrot.lane.b32.xlu0 %v395_v46, %s1631_s3 }
 0x590   :  { %v418_v50 = vpop.permute.xlu2 %417 }
 0x591   :  { %v420_v51 = vmul.f32 %v418_v50, %v410_v49 }
 0x593   :  { %422 = vrot.lane.b32.xlu1 %v420_v51, %s1631_s3 }
 0x5fb   :  { %v398_v54 = vpop.permute.xlu0 %397 }
 0x5fc   :  { %v400_v55 = vadd.f32 %v398_v54, %v390_v53 }
 0x5fe   :  { %1509 = vtanh.f32 %v400_v55  ;;  %v495_v30 = vrot.slane %v400_v55, 6 }
 0x604   :  { %v1510_v57 = vpop.eup %1509 }
 0x605   :  { %403 = vrot.lane.b32.xlu2 %v1510_v57, %s1632_s6  ;;  %v423_v59 = vpop.permute.xlu1 %422 }
 0x606   :  { %v425_v60 = vadd.f32 %v423_v59, %v415_v58 }
 0x608   :  { %1511 = vtanh.f32 %v425_v60  ;;  %v520_v35 = vrot.slane %v425_v60, 2 }
 0x60e   :  { %v1512_v61 = vpop.eup %1511 }
 0x60f   :  { %428 = vrot.lane.b32.xlu0 %v1512_v61, %s1632_s6 }
 0x65f   :  { %v404_v62 = vpop.permute.xlu2 %403 }
 0x660   :  { %v1819_v63 = vmul.f32 %v404_v62, %v385_v42 }
 0x662   :  { %v433_v1 = vrot.slane %v1819_v63, 4 }
 0x664   :  { %434 = vrot.lane.b32.xlu1 %v433_v1, %s1633_s29 }
 0x681   :  { %v429_v2 = vpop.permute.xlu0 %428 }
 0x682   :  { %v1823_v3 = vmul.f32 %v429_v2, %v410_v49  ;;  %v1853_v49 = vadd.f32 %v1753_v7, %v1809_v29 }
 0x684   :  { %v463_v4 = vrot.slane %v1823_v3, 2 }
 0x686   :  { %464 = vrot.lane.b32.xlu2 %v463_v4, %s1633_s29 }
 0x6d6   :  { %v435_v6 = vpop.permute.xlu1 %434 }
 0x6d7   :  { %1427 = vmatmul.msk.f32.vlgmr.msra.gmra.mxu2 %vm113_vm3, %v435_v6 }
 0x6d8   :  { %1442 = vmatpush.msk.msra.mxu2 %vm117_vm0, %v1707_v0 }
 0x6e0   :  { %v465_v8 = vpop.permute.xlu2 %464 }
 0x6e1   :  { %1429 = vmatmul.msk.f32.vlgmr.msra.gmra.mxu3 %vm113_vm3, %v465_v8 }
 0x6e2   :  { %1444 = vmatpush.msk.msra.mxu3 %vm117_vm0, %v1723_v5 }
 0x75a   :  { %v455_v9 = vpop.f32.mrf.mxu2 }
 0x75b   :  { %v459_v10 = vrot.slane %v455_v9, 2 }
 0x75d   :  { %v461_v13 = vadd.f32 %v459_v10, %v1759_v11 }
 0x75f   :  { %1513 = vtanh.f32 %v461_v13  ;;  %v489_v0 = vmul.f32 0.5, %v461_v13 }
 0x764   :  { %v485_v14 = vpop.f32.mrf.mxu3 }
 0x765   :  { %v1514_v15 = vpop.eup %1513  ;;  %v488_v16 = vadd.f32 %v485_v14, %v1764_v18 }
 0x766   :  { %499 = vrot.lane.b32.xlu0 %v1514_v15, %s1630_s0 }
 0x767   :  { %1515 = vtanh.f32 %v488_v16  ;;  %v514_v19 = vmul.f32 0.5, %v488_v16 }
 0x768   :  { %1517 = vtanh.f32 %v489_v0 }
 0x769   :  { %1519 = vtanh.f32 %v514_v19 }
 0x76d   :  { %v1516_v17 = vpop.eup %1515 }
 0x76e   :  { %524 = vrot.lane.b32.xlu1 %v1516_v17, %s1630_s0  ;;  %v1518_v20 = vpop.eup %1517 }
 0x76f   :  { %v491_v5 = vadd.f32 1.0, %v1518_v20  ;;  %v1520_v23 = vpop.eup %1519 }
 0x770   :  { %v516_v26 = vadd.f32 1.0, %v1520_v23 }
 0x771   :  { %v492_v21 = vmul.f32 0.5, %v491_v5 }
 0x772   :  { %v517_v18 = vmul.f32 0.5, %v516_v26 }
 0x773   :  { %v497_v31 = vmul.f32 %v495_v30, %v492_v21 }
 0x774   :  { %v522_v36 = vmul.f32 %v520_v35, %v517_v18 }
 0x7d8   :  { %v500_v11 = vpop.permute.xlu0 %499 }
 0x7d9   :  { %v502_v24 = vmul.f32 %v500_v11, %v492_v21 }
 0x7db   :  { %504 = vrot.lane.b32.xlu2 %v502_v24, %s1631_s3 }
 0x7e0   :  { %v525_v27 = vpop.permute.xlu1 %524 }
 0x7e1   :  { %v527_v28 = vmul.f32 %v525_v27, %v517_v18 }
 0x7e3   :  { %529 = vrot.lane.b32.xlu0 %v527_v28, %s1631_s3 }
 0x835   :  { %v505_v32 = vpop.permute.xlu2 %504 }
 0x836   :  { %v507_v33 = vadd.f32 %v505_v32, %v497_v31 }
 0x838   :  { %1521 = vtanh.f32 %v507_v33  ;;  %v601_v8 = vrot.slane %v507_v33, 6 }
 0x83e   :  { %v1522_v34 = vpop.eup %1521 }
 0x83f   :  { %510 = vrot.lane.b32.xlu1 %v1522_v34, %s1632_s6 }
 0x855   :  { %v530_v37 = vpop.permute.xlu0 %529 }
 0x856   :  { %v532_v38 = vadd.f32 %v530_v37, %v522_v36 }
 0x858   :  { %1523 = vtanh.f32 %v532_v38  ;;  %v626_v14 = vrot.slane %v532_v38, 2 }
 0x85e   :  { %v1524_v39 = vpop.eup %1523 }
 0x85f   :  { %535 = vrot.lane.b32.xlu2 %v1524_v39, %s1632_s6 }
 0x8b1   :  { %v511_v40 = vpop.permute.xlu1 %510 }
 0x8b2   :  { %v1841_v41 = vmul.f32 %v511_v40, %v492_v21 }
 0x8b4   :  { %v540_v42 = vrot.slane %v1841_v41, 6 }
 0x8b6   :  { %541 = vrot.lane.b32.xlu1 %v540_v42, %s1633_s29 }
 0x8b9   :  { %v536_v44 = vpop.permute.xlu2 %535 }
 0x8ba   :  { %v1845_v46 = vmul.f32 %v536_v44, %v517_v18 }
 0x8bc   :  { %567 = vrot.lane.b32.xlu0 %v1845_v46, %s1633_s29 }
 0x928   :  { %v542_v47 = vpop.permute.xlu1 %541 }
 0x929   :  { %1431 = vmatmul.msk.f32.vlgmr.msra.gmra.mxu0 %vm113_vm3, %v542_v47 }
 0x92e   :  { %v568_v48 = vpop.permute.xlu0 %567 }
 0x92f   :  { %1433 = vmatmul.msk.f32.vlgmr.msra.gmra.mxu1 %vm113_vm3, %v568_v48 }
 0x9a6   :  { %v562_v50 = vpop.f32.mrf.mxu0 }
 0x9a7   :  { %v565_v51 = vadd.f32 %v562_v50, %v1853_v49 }
 0x9a9   :  { %1525 = vtanh.f32 %v565_v51  ;;  %v595_v57 = vmul.f32 0.5, %v565_v51 }
 0x9ac   :  { %v588_v52 = vpop.f32.mrf.mxu1 }
 0x9ad   :  { %v592_v53 = vrot.slane %v588_v52, 2 }
 0x9af   :  { %v1526_v54 = vpop.eup %1525  ;;  %v594_v55 = vadd.f32 %v592_v53, %v1761_v12 }
 0x9b0   :  { %605 = vrot.lane.b32.xlu2 %v1526_v54, %s1630_s0 }
 0x9b1   :  { %1527 = vtanh.f32 %v594_v55  ;;  %v620_v61 = vmul.f32 0.5, %v594_v55 }
 0x9b2   :  { %1529 = vtanh.f32 %v595_v57 }
 0x9b3   :  { %1531 = vtanh.f32 %v620_v61 }
 0x9b7   :  { %v1528_v56 = vpop.eup %1527 }
 0x9b8   :  { %630 = vrot.lane.b32.xlu0 %v1528_v56, %s1630_s0  ;;  %v1530_v58 = vpop.eup %1529 }
 0x9b9   :  { %v597_v7 = vadd.f32 1.0, %v1530_v58  ;;  %v1532_v62 = vpop.eup %1531 }
 0x9ba   :  { %v622_v1 = vadd.f32 1.0, %v1532_v62 }
 0x9bb   :  { %v598_v29 = vmul.f32 0.5, %v597_v7 }
 0x9bc   :  { %v623_v2 = vmul.f32 0.5, %v622_v1 }
 0x9bd   :  { %v603_v9 = vmul.f32 %v601_v8, %v598_v29 }
 0x9be   :  { %v628_v15 = vmul.f32 %v626_v14, %v623_v2 }
 0xa0a   :  { %v606_v59 = vpop.permute.xlu2 %605 }
 0xa0b   :  { %v608_v60 = vmul.f32 %v606_v59, %v598_v29 }
 0xa0d   :  { %610 = vrot.lane.b32.xlu1 %v608_v60, %s1631_s3 }
 0xa2a   :  { %v631_v4 = vpop.permute.xlu0 %630 }
 0xa2b   :  { %v633_v6 = vmul.f32 %v631_v4, %v623_v2 }
 0xa2d   :  { %635 = vrot.lane.b32.xlu2 %v633_v6, %s1631_s3 }
 0xa7f   :  { %v611_v10 = vpop.permute.xlu1 %610 }
 0xa80   :  { %v613_v13 = vadd.f32 %v611_v10, %v603_v9 }
 0xa82   :  { %1533 = vtanh.f32 %v613_v13  ;;  %v710_v52 = vrot.slane %v613_v13, 6 }
 0xa87   :  { %v636_v16 = vpop.permute.xlu2 %635 }
 0xa88   :  { %v1534_v17 = vpop.eup %1533  ;;  %v638_v0 = vadd.f32 %v636_v16, %v628_v15 }
 0xa89   :  { %616 = vrot.lane.b32.xlu0 %v1534_v17, %s1632_s6 }
 0xa8a   :  { %1535 = vtanh.f32 %v638_v0  ;;  %v735_v56 = vrot.slane %v638_v0, 2 }
 0xa90   :  { %v1536_v19 = vpop.eup %1535 }
 0xa91   :  { %641 = vrot.lane.b32.xlu1 %v1536_v19, %s1632_s6 }
 0xafb   :  { %v617_v20 = vpop.permute.xlu0 %616 }
 0xafc   :  { %v1863_v5 = vmul.f32 %v617_v20, %v598_v29 }
 0xafe   :  { %646 = vrot.lane.b32.xlu2 %v1863_v5, %s1633_s29 }
 0xb03   :  { %v642_v21 = vpop.permute.xlu1 %641 }
 0xb04   :  { %v1867_v23 = vmul.f32 %v642_v21, %v623_v2 }
 0xb06   :  { %v675_v11 = vrot.slane %v1867_v23, 6 }
 0xb08   :  { %676 = vrot.lane.b32.xlu0 %v675_v11, %s1633_s29 }
 0xb58   :  { %v647_v24 = vpop.permute.xlu2 %646 }
 0xb59   :  { %1435 = vmatmul.msk.f32.vlgmr.msrb.gmra.mxu2 %vm113_vm3, %v647_v24 }
 0xb7a   :  { %v677_v26 = vpop.permute.xlu0 %676 }
 0xb7b   :  { %1437 = vmatmul.msk.f32.vlgmr.msrb.gmra.mxu3 %vm113_vm3, %v677_v26 }
 0xbdc   :  { %v667_v18 = vpop.f32.mrf.mxu2 }
 0xbdd   :  { %v671_v27 = vrot.slane %v667_v18, 6 }
 0xbdf   :  { %v673_v28 = vadd.f32 %v671_v27, %v1853_v49 }
 0xbe1   :  { %1537 = vtanh.f32 %v673_v28  ;;  %v704_v35 = vmul.f32 0.5, %v673_v28 }
 0xbe7   :  { %v1538_v30 = vpop.eup %1537 }
 0xbe8   :  { %714 = vrot.lane.b32.xlu1 %v1538_v30, %s1630_s0 }
 0xbfe   :  { %v697_v31 = vpop.f32.mrf.mxu3 }
 0xbff   :  { %v701_v32 = vrot.slane %v697_v31, 4 }
 0xc01   :  { %v703_v33 = vadd.f32 %v701_v32, %v1761_v12 }
 0xc03   :  { %1539 = vtanh.f32 %v703_v33  ;;  %v729_v37 = vmul.f32 0.5, %v703_v33 }
 0xc04   :  { %1541 = vtanh.f32 %v704_v35 }
 0xc05   :  { %1543 = vtanh.f32 %v729_v37 }
 0xc09   :  { %v1540_v34 = vpop.eup %1539 }
 0xc0a   :  { %739 = vrot.lane.b32.xlu2 %v1540_v34, %s1630_s0  ;;  %v1542_v36 = vpop.eup %1541 }
 0xc0b   :  { %v706_v38 = vadd.f32 1.0, %v1542_v36  ;;  %v1544_v44 = vpop.eup %1543 }
 0xc0c   :  { %v731_v47 = vadd.f32 1.0, %v1544_v44 }
 0xc0d   :  { %v707_v39 = vmul.f32 0.5, %v706_v38 }
 0xc0e   :  { %v732_v48 = vmul.f32 0.5, %v731_v47 }
 0xc0f   :  { %v712_v53 = vmul.f32 %v710_v52, %v707_v39 }
 0xc10   :  { %v737_v58 = vmul.f32 %v735_v56, %v732_v48 }
 0xc5a   :  { %v715_v40 = vpop.permute.xlu1 %714 }
 0xc5b   :  { %v717_v42 = vmul.f32 %v715_v40, %v707_v39 }
 0xc5d   :  { %719 = vrot.lane.b32.xlu0 %v717_v42, %s1631_s3 }
 0xc64   :  { %v740_v50 = vpop.permute.xlu2 %739 }
 0xc65   :  { %v742_v51 = vmul.f32 %v740_v50, %v732_v48 }
 0xc67   :  { %744 = vrot.lane.b32.xlu1 %v742_v51, %s1631_s3 }
 0xccf   :  { %v720_v54 = vpop.permute.xlu0 %719 }
 0xcd0   :  { %v722_v55 = vadd.f32 %v720_v54, %v712_v53 }
 0xcd2   :  { %1545 = vtanh.f32 %v722_v55  ;;  %v820_v33 = vrot.slane %v722_v55, 6 }
 0xcd8   :  { %v1546_v57 = vpop.eup %1545 }
 0xcd9   :  { %725 = vrot.lane.b32.xlu2 %v1546_v57, %s1632_s6  ;;  %v745_v7 = vpop.permute.xlu1 %744 }
 0xcda   :  { %v747_v29 = vadd.f32 %v745_v7, %v737_v58 }
 0xcdc   :  { %1547 = vtanh.f32 %v747_v29  ;;  %v845_v38 = vrot.slane %v747_v29, 2 }
 0xce2   :  { %v1548_v59 = vpop.eup %1547 }
 0xce3   :  { %750 = vrot.lane.b32.xlu0 %v1548_v59, %s1632_s6 }
 0xd33   :  { %v726_v60 = vpop.permute.xlu2 %725 }
 0xd34   :  { %v1881_v61 = vmul.f32 %v726_v60, %v707_v39 }
 0xd36   :  { %v755_v62 = vrot.slane %v1881_v61, 2 }
 0xd38   :  { %756 = vrot.lane.b32.xlu1 %v755_v62, %s1633_s29 }
 0xd55   :  { %v751_v1 = vpop.permute.xlu0 %750 }
 0xd56   :  { %v1885_v2 = vmul.f32 %v751_v1, %v732_v48 }
 0xd58   :  { %v785_v4 = vrot.slane %v1885_v2, 4 }
 0xd5a   :  { %786 = vrot.lane.b32.xlu2 %v785_v4, %s1633_s29 }
 0xdaa   :  { %v757_v6 = vpop.permute.xlu1 %756 }
 0xdab   :  { %1439 = vmatmul.msk.f32.vlgmr.msrb.gmra.mxu0 %vm113_vm3, %v757_v6 }
 0xdb4   :  { %v787_v8 = vpop.permute.xlu2 %786 }
 0xdb5   :  { %1441 = vmatmul.msk.f32.vlgmr.msrb.gmra.mxu1 %vm113_vm3, %v787_v8 }
 0xe28   :  { %v777_v9 = vpop.f32.mrf.mxu0 }
 0xe29   :  { %v781_v10 = vrot.slane %v777_v9, 4 }
 0xe2b   :  { %v783_v13 = vadd.f32 %v781_v10, %v1853_v49 }
 0xe2d   :  { %1549 = vtanh.f32 %v783_v13  ;;  %v814_v19 = vmul.f32 0.5, %v783_v13 }
 0xe32   :  { %v807_v14 = vpop.f32.mrf.mxu1 }
 0xe33   :  { %v1550_v15 = vpop.eup %1549  ;;  %v811_v16 = vrot.slane %v807_v14, 6 }
 0xe34   :  { %824 = vrot.lane.b32.xlu0 %v1550_v15, %s1630_s0 }
 0xe35   :  { %v813_v17 = vadd.f32 %v811_v16, %v1761_v12 }
 0xe37   :  { %1551 = vtanh.f32 %v813_v17  ;;  %v839_v21 = vmul.f32 0.5, %v813_v17 }
 0xe38   :  { %1553 = vtanh.f32 %v814_v19 }
 0xe39   :  { %1555 = vtanh.f32 %v839_v21 }
 0xe3d   :  { %v1552_v0 = vpop.eup %1551 }
 0xe3e   :  { %849 = vrot.lane.b32.xlu1 %v1552_v0, %s1630_s0  ;;  %v1554_v20 = vpop.eup %1553 }
 0xe3f   :  { %v816_v11 = vadd.f32 1.0, %v1554_v20  ;;  %v1556_v27 = vpop.eup %1555 }
 0xe40   :  { %v841_v28 = vadd.f32 1.0, %v1556_v27 }
 0xe41   :  { %v817_v24 = vmul.f32 0.5, %v816_v11 }
 0xe42   :  { %v842_v30 = vmul.f32 0.5, %v841_v28 }
 0xe43   :  { %v822_v34 = vmul.f32 %v820_v33, %v817_v24 }
 0xe44   :  { %v847_v39 = vmul.f32 %v845_v38, %v842_v30 }
 0xea6   :  { %v825_v26 = vpop.permute.xlu0 %824 }
 0xea7   :  { %v827_v18 = vmul.f32 %v825_v26, %v817_v24 }
 0xea9   :  { %829 = vrot.lane.b32.xlu2 %v827_v18, %s1631_s3 }
 0xeb0   :  { %v850_v31 = vpop.permute.xlu1 %849 }
 0xeb1   :  { %v852_v32 = vmul.f32 %v850_v31, %v842_v30 }
 0xeb3   :  { %854 = vrot.lane.b32.xlu0 %v852_v32, %s1631_s3 }
 0xf03   :  { %v830_v35 = vpop.permute.xlu2 %829 }
 0xf04   :  { %v832_v36 = vadd.f32 %v830_v35, %v822_v34 }
 0xf06   :  { %1557 = vtanh.f32 %v832_v36  ;;  %v927_v16 = vrot.slane %v832_v36, 6 }
 0xf0c   :  { %v1558_v37 = vpop.eup %1557 }
 0xf0d   :  { %835 = vrot.lane.b32.xlu1 %v1558_v37, %s1632_s6 }
 0xf25   :  { %v855_v40 = vpop.permute.xlu0 %854 }
 0xf26   :  { %v857_v42 = vadd.f32 %v855_v40, %v847_v39 }
 0xf28   :  { %1559 = vtanh.f32 %v857_v42  ;;  %v952_v20 = vrot.slane %v857_v42, 2 }
 0xf2e   :  { %v1560_v44 = vpop.eup %1559 }
 0xf2f   :  { %860 = vrot.lane.b32.xlu2 %v1560_v44, %s1632_s6 }
 0xf7f   :  { %v836_v47 = vpop.permute.xlu1 %835 }
 0xf80   :  { %v1899_v48 = vmul.f32 %v836_v47, %v817_v24 }
 0xf82   :  { %v865_v50 = vrot.slane %v1899_v48, 4 }
 0xf84   :  { %866 = vrot.lane.b32.xlu0 %v865_v50, %s1633_s29 }
 0xf89   :  { %v861_v51 = vpop.permute.xlu2 %860 }
 0xf8a   :  { %v1903_v52 = vmul.f32 %v861_v51, %v842_v30 }
 0xf8c   :  { %v895_v53 = vrot.slane %v1903_v52, 2 }
 0xf8e   :  { %896 = vrot.lane.b32.xlu1 %v895_v53, %s1633_s29 }
 0xff6   :  { %v867_v54 = vpop.permute.xlu0 %866 }
 0xff7   :  { %1443 = vmatmul.msk.f32.vlgmr.msra.gmra.mxu2 %vm113_vm3, %v867_v54 }
0x1000   :  { %v897_v55 = vpop.permute.xlu1 %896 }
0x1001   :  { %1445 = vmatmul.msk.f32.vlgmr.msra.gmra.mxu3 %vm113_vm3, %v897_v55 }
0x107a   :  { %v887_v56 = vpop.f32.mrf.mxu2 }
0x107b   :  { %v891_v57 = vrot.slane %v887_v56, 2 }
0x107d   :  { %v893_v58 = vadd.f32 %v891_v57, %v1853_v49 }
0x107f   :  { %1561 = vtanh.f32 %v893_v58  ;;  %v921_v62 = vmul.f32 0.5, %v893_v58 }
0x1084   :  { %v917_v7 = vpop.f32.mrf.mxu3 }
0x1085   :  { %v1562_v29 = vpop.eup %1561  ;;  %v920_v59 = vadd.f32 %v917_v7, %v1761_v12 }
0x1086   :  { %931 = vrot.lane.b32.xlu2 %v1562_v29, %s1630_s0 }
0x1087   :  { %1563 = vtanh.f32 %v920_v59  ;;  %v946_v49 = vmul.f32 0.5, %v920_v59 }
0x1088   :  { %1565 = vtanh.f32 %v921_v62 }
0x1089   :  { %1567 = vtanh.f32 %v946_v49 }
0x108d   :  { %v1564_v60 = vpop.eup %1563 }
0x108e   :  { %956 = vrot.lane.b32.xlu0 %v1564_v60, %s1630_s0  ;;  %v1566_v1 = vpop.eup %1565 }
0x108f   :  { %v923_v4 = vadd.f32 1.0, %v1566_v1  ;;  %v1568_v10 = vpop.eup %1567 }
0x1090   :  { %v948_v13 = vadd.f32 1.0, %v1568_v10 }
0x1091   :  { %v924_v6 = vmul.f32 0.5, %v923_v4 }
0x1092   :  { %v949_v12 = vmul.f32 0.5, %v948_v13 }
0x1093   :  { %v929_v17 = vmul.f32 %v927_v16, %v924_v6 }
0x1094   :  { %v954_v21 = vmul.f32 %v952_v20, %v949_v12 }
0x10e0   :  { %v932_v8 = vpop.permute.xlu2 %931 }
0x10e1   :  { %v934_v9 = vmul.f32 %v932_v8, %v924_v6 }
0x10e3   :  { %936 = vrot.lane.b32.xlu1 %v934_v9, %s1631_s3 }
0x1100   :  { %v957_v14 = vpop.permute.xlu0 %956 }
0x1101   :  { %v959_v15 = vmul.f32 %v957_v14, %v949_v12 }
0x1103   :  { %961 = vrot.lane.b32.xlu2 %v959_v15, %s1631_s3 }
0x1155   :  { %v937_v0 = vpop.permute.xlu1 %936 }
0x1156   :  { %v939_v19 = vadd.f32 %v937_v0, %v929_v17 }
0x1158   :  { %1569 = vtanh.f32 %v939_v19 }
0x115d   :  { %v962_v11 = vpop.permute.xlu2 %961 }
0x115e   :  { %v1570_v24 = vpop.eup %1569  ;;  %v964_v26 = vadd.f32 %v962_v11, %v954_v21 }
0x115f   :  { %942 = vrot.lane.b32.xlu0 %v1570_v24, %s1632_s6 }
0x1160   :  { %1571 = vtanh.f32 %v964_v26 }
0x1166   :  { %v1572_v18 = vpop.eup %1571 }
0x1167   :  { %967 = vrot.lane.b32.xlu1 %v1572_v18, %s1632_s6 }
0x11d1   :  { %v943_v27 = vpop.permute.xlu0 %942 }
0x11d2   :  { %v1917_v28 = vmul.f32 %v943_v27, %v924_v6 }
0x11d4   :  { %v979_v31 = vrot.slane %v1917_v28, 7  ;;  %v972_v33 = vrot.slane %v1917_v28, 6 }
0x11d9   :  { %v968_v30 = vpop.permute.xlu1 %967 }
0x11da   :  { %v1920_v32 = vmul.f32 %v968_v30, %v949_v12 }
0x11dc   :  { %v975_v34 = vrot.slane %v1920_v32, 7  ;;  %v981_v35 = vsel %vm977_vm4, %v979_v31, %v1920_v32 }
0x11dd   :  { %v993_v36 = vmul.f32 %v981_v35, %v1920_v32  ;;  %v1018_v37 = vrot.slane %v981_v35, 6  ;;  %v1074_v42 = vrot.slane %v981_v35, 2  ;;  %v1046_v44 = vrot.slane %v981_v35, 4 }
0x11de   :  { %v978_v38 = vsel %vm977_vm4, %v972_v33, %v975_v34  ;;  %v1099_v47 = vmul.f32 %v981_v35, %v1845_v46 }
0x11df   :  { %995 = vrot.lane.b32.xlu2 %v993_v36, %s1633_s29  ;;  %v1020_v39 = vmul.f32 %v1018_v37, %v1903_v52  ;;  %v984_v40 = vmul.f32 %v978_v38, %v1773_v43  ;;  %v1076_v50 = vmul.f32 %v1074_v42, %v1867_v23  ;;  %v1048_v51 = vmul.f32 %v1046_v44, %v1885_v2 }
0x11e0   :  { %v1165_v53 = vmul.f32 %v1074_v42, %v1777_v45  ;;  %v1142_v54 = vmul.f32 %v1046_v44, %v1799_v25  ;;  %v1091_v55 = vmul.f32 %v978_v38, %v1863_v5  ;;  %v1006_v56 = vrot.slane %v978_v38, 6 }
0x11e1   :  { %1022 = vrot.lane.b32.xlu0 %v1020_v39, %s1633_s29  ;;  %986 = vrot.lane.b32.xlu1 %v984_v40, %s1633_s29  ;;  %v1035_v57 = vrot.slane %v978_v38, 4  ;;  %v1119_v29 = vmul.f32 %v1018_v37, %v1823_v3  ;;  %v1063_v59 = vrot.slane %v978_v38, 2 }
0x11e2   :  { %v1008_v58 = vmul.f32 %v1006_v56, %v1795_v22  ;;  %v1111_v62 = vmul.f32 %v1006_v56, %v1881_v61  ;;  %v982_v56 = vlaneseq }
0x11e3   :  { %v1037_v7 = vmul.f32 %v1035_v57, %v1819_v63  ;;  %v1065_v60 = vmul.f32 %v1063_v59, %v1841_v41  ;;  %v1157_v1 = vmul.f32 %v1063_v59, %v1917_v28  ;;  %v1134_v4 = vmul.f32 %v1035_v57, %v1899_v48 }
0x11e7   :  { %1101 = vrot.lane.b32.xlu2 %v1099_v47, %s1633_s29 }
0x11e9   :  { %1078 = vrot.lane.b32.xlu0 %v1076_v50, %s1633_s29  ;;  %1050 = vrot.lane.b32.xlu1 %v1048_v51, %s1633_s29 }
0x11ef   :  { %1167 = vrot.lane.b32.xlu2 %v1165_v53, %s1633_s29 }
0x11f1   :  { %1144 = vrot.lane.b32.xlu0 %v1142_v54, %s1633_s29  ;;  %1093 = vrot.lane.b32.xlu1 %v1091_v55, %s1633_s29 }
0x11f7   :  { %1010 = vrot.lane.b32.xlu2 %v1008_v58, %s1633_s29 }
0x11f9   :  { %1039 = vrot.lane.b32.xlu0 %v1037_v7, %s1633_s29  ;;  %1121 = vrot.lane.b32.xlu1 %v1119_v29, %s1633_s29  ;;  %v983_v29 = vand.u32 127, %v982_v56  ;;  %v1635_v56 = vmov 1  }
0x11fa   :  { %1466 = vset.pattern.permute.xlu0 %v1635_v56 }
0x11fb   :  { %vm1029_vm9 = vcmp.eq.s32.totalorder %v983_v29, 1  ;;  %vm1057_vm10 = vcmp.eq.s32.totalorder %v983_v29, 2  ;;  %vm1002_vm11 = vcmp.eq.s32.totalorder %v983_v29, 0  ;;  %vm1085_vm12 = vcmp.eq.s32.totalorder %v983_v29, 3 }
0x11fc   :  { %vm1128_vm13 = vcmp.eq.s32.totalorder %v983_v29, 5  ;;  %vm1108_vm14 = vcmp.eq.s32.totalorder %v983_v29, 4  ;;  %vm1174_vm15 = vcmp.eq.s32.totalorder %v983_v29, 7  ;;  %vm1151_vm1 = vcmp.eq.s32.totalorder %v983_v29, 6 }
0x11ff   :  { %1067 = vrot.lane.b32.xlu2 %v1065_v60, %s1633_s29 }
0x1201   :  { %1113 = vrot.lane.b32.xlu0 %v1111_v62, %s1633_s29  ;;  %1159 = vrot.lane.b32.xlu1 %v1157_v1, %s1633_s29 }
0x1207   :  { %1136 = vrot.lane.b32.xlu2 %v1134_v4, %s1633_s29 }
0x1239   :  { %v996_v6 = vpop.permute.xlu2 %995 }
0x123a   :  { %v998_v8 = vsel %vm989_vm5, %v996_v6, 0.0 }
0x123b   :  { %999 = vadd.xlane.f32.xlu2 %v998_v8 }
0x1241   :  { %v1102_v9 = vpop.permute.xlu2 %1101 }
0x1242   :  { %v1104_v49 = vsel %vm989_vm5, %v1102_v9, 0.0 }
0x1243   :  { %1105 = vadd.xlane.f32.xlu2 %v1104_v49 }
0x1249   :  { %v1168_v10 = vpop.permute.xlu2 %1167 }
0x124a   :  { %v1170_v36 = vsel %vm1070_vm8, %v1168_v10, 0.0 }
0x1251   :  { %v1011_v13 = vpop.permute.xlu2 %1010 }
0x1252   :  { %v1014_v27 = vsel %vm1013_vm6, %v1011_v13, 0.0 }
0x1253   :  { %v1023_v12 = vpop.permute.xlu0 %1022  ;;  %v987_v14 = vpop.permute.xlu1 %986 }
0x1254   :  { %v1025_v15 = vsel %vm1013_vm6, %v1023_v12, 0.0  ;;  %v990_v16 = vsel %vm989_vm5, %v987_v14, 0.0 }
0x1255   :  { %1026 = vadd.xlane.f32.xlu1 %v1025_v15  ;;  %991 = vadd.xlane.f32.xlu2 %v990_v16 }
0x1259   :  { %v1068_v17 = vpop.permute.xlu2 %1067 }
0x125a   :  { %v1071_v21 = vsel %vm1070_vm8, %v1068_v17, 0.0 }
0x125b   :  { %v1079_v0 = vpop.permute.xlu0 %1078  ;;  %v1051_v19 = vpop.permute.xlu1 %1050 }
0x125c   :  { %v1081_v20 = vsel %vm1070_vm8, %v1079_v0, 0.0  ;;  %v1053_v11 = vsel %vm1042_vm7, %v1051_v19, 0.0 }
0x125d   :  { %1082 = vadd.xlane.f32.xlu0 %v1081_v20  ;;  %1072 = vadd.xlane.f32.xlu2 %v1071_v21 }
0x125e   :  { %1054 = vadd.xlane.f32.xlu1 %v1053_v11 }
0x1261   :  { %v1137_v24 = vpop.permute.xlu2 %1136 }
0x1262   :  { %v1139_v30 = vsel %vm1042_vm7, %v1137_v24, 0.0 }
0x1263   :  { %v1145_v26 = vpop.permute.xlu0 %1144  ;;  %v1094_v18 = vpop.permute.xlu1 %1093 }
0x1264   :  { %v1096_v31 = vsel %vm989_vm5, %v1094_v18, 0.0  ;;  %v1147_v44 = vsel %vm1042_vm7, %v1145_v26, 0.0 }
0x1265   :  { %1015 = vadd.xlane.f32.xlu0 %v1014_v27  ;;  %1140 = vadd.xlane.f32.xlu2 %v1139_v30 }
0x1266   :  { %1097 = vadd.xlane.f32.xlu1 %v1096_v31 }
0x126b   :  { %v1040_v33 = vpop.permute.xlu0 %1039  ;;  %v1122_v34 = vpop.permute.xlu1 %1121 }
0x126c   :  { %v1043_v35 = vsel %vm1042_vm7, %v1040_v33, 0.0  ;;  %v1124_v37 = vsel %vm1013_vm6, %v1122_v34, 0.0 }
0x126d   :  { %1044 = vadd.xlane.f32.xlu0 %v1043_v35  ;;  %1171 = vadd.xlane.f32.xlu2 %v1170_v36 }
0x126e   :  { %1125 = vadd.xlane.f32.xlu1 %v1124_v37 }
0x1273   :  { %v1114_v38 = vpop.permute.xlu0 %1113  ;;  %v1160_v39 = vpop.permute.xlu1 %1159 }
0x1274   :  { %v1116_v40 = vsel %vm1013_vm6, %v1114_v38, 0.0  ;;  %v1162_v42 = vsel %vm1070_vm8, %v1160_v39, 0.0 }
0x1275   :  { %1117 = vadd.xlane.f32.xlu0 %v1116_v40 }
0x1276   :  { %1163 = vadd.xlane.f32.xlu1 %v1162_v42 }
0x127d   :  { %1148 = vadd.xlane.f32.xlu0 %v1147_v44 }
0x12ae   :  { %v1000_v47 = vpop.xlane.xlu2 %999 }
0x12b6   :  { %v1106_v50 = vpop.xlane.xlu2 %1105 }
0x12c8   :  { %v1027_v51 = vpop.xlane.xlu1 %1026  ;;  %v992_v53 = vpop.xlane.xlu2 %991 }
0x12c9   :  { %v1001_v6 = vadd.f32 %v1000_v47, %v992_v53 }
0x12cb   :  { %v1003_v12 = vsel %vm1002_vm11, %v1001_v6, 0.0 }
0x12d0   :  { %v1083_v54 = vpop.xlane.xlu0 %1082  ;;  %v1073_v7 = vpop.xlane.xlu2 %1072 }
0x12d1   :  { %v1055_v55 = vpop.xlane.xlu1 %1054  ;;  %v1084_v10 = vadd.f32 %v1083_v54, %v1073_v7 }
0x12d3   :  { %v1086_v16 = vsel %vm1085_vm12, %v1084_v10, 0.0  ;;  %v1637_v10 = vmov 4  }
0x12d4   :  { %v1088_v19 = vrot.slane %v1086_v16, 6 }
0x12d8   :  { %v1016_v57 = vpop.xlane.xlu0 %1015  ;;  %v1141_v49 = vpop.xlane.xlu2 %1140 }
0x12d9   :  { %v1098_v58 = vpop.xlane.xlu1 %1097  ;;  %v1028_v59 = vadd.f32 %v1027_v51, %v1016_v57  ;;  %v1636_v57 = vmov 0  }
0x12da   :  { %v1107_v21 = vadd.f32 %v1106_v50, %v1098_v58  ;;  %1465 = vset.pattern.permute.xlu2 %v1636_v57 }
0x12db   :  { %v1030_v62 = vsel %vm1029_vm9, %v1028_v59, 0.0 }
0x12dc   :  { %v1032_v9 = vrot.slane %v1030_v62, 2  ;;  %v1109_v31 = vsel %vm1108_vm14, %v1107_v21, 0.0 }
0x12de   :  { %v1034_v14 = vadd.f32 %v1032_v9, %v1003_v12  ;;  %v1639_v12 = vmov 3  }
0x12e0   :  { %v1045_v60 = vpop.xlane.xlu0 %1044  ;;  %v1172_v26 = vpop.xlane.xlu2 %1171 }
0x12e1   :  { %v1056_v1 = vadd.f32 %v1055_v55, %v1045_v60  ;;  %v1126_v4 = vpop.xlane.xlu1 %1125  ;;  %v1634_v55 = vmov 2  }
0x12e2   :  { %1467 = vset.pattern.permute.xlu1 %v1634_v55 }
0x12e3   :  { %v1058_v8 = vsel %vm1057_vm10, %v1056_v1, 0.0 }
0x12e4   :  { %v1060_v13 = vrot.slane %v1058_v8, 4 }
0x12e6   :  { %v1062_v0 = vadd.f32 %v1060_v13, %v1034_v14  ;;  %v1638_v13 = vmov 7   ;;  %v1640_v14 = vmov 6  }
0x12e8   :  { %v1118_v15 = vpop.xlane.xlu0 %1117  ;;  %v1090_v24 = vadd.f32 %v1088_v19, %v1062_v0  ;;  %v1313_v0 = vld [vmem:[%s2021_s8] sm:$0x7f] }
0x12e9   :  { %v1127_v17 = vadd.f32 %v1126_v4, %v1118_v15  ;;  %v1164_v20 = vpop.xlane.xlu1 %1163  ;;  %v1641_v15 = vmov 5   ;;  %v1312_v19 = vld [vmem:[%s2020_s7] sm:$0x7f]  ;;  %1446 = vmatpush.msk.msra.mxu0 %vm117_vm0, %v1313_v0  ;;  %s1642_s7 = smov [#allocation4]  }
0x12ea   :  { %v1173_v18 = vadd.f32 %v1172_v26, %v1164_v20  ;;  %v1110_v34 = vadd.f32 %v1109_v31, %v1090_v24  ;;  %1448 = vmatpush.msk.msra.mxu1 %vm117_vm0, %v1312_v19  ;;  %s1394_s8 = sshll.u32 %s1642_s7, 4  ;;  %vm1375_vm0 = vcmask 9216   ;;  %s1395_s8 = int_to_ptr.vmem [resolvable:$true] %s1394_s8 }
0x12eb   :  { %v1129_v11 = vsel %vm1128_vm13, %v1127_v17, 0.0 }
0x12ec   :  { %v1131_v27 = vrot.slane %v1129_v11, 2  ;;  %v1175_v35 = vsel %vm1174_vm15, %v1173_v18, 0.0 }
0x12ed   :  { %v1177_v39 = vrot.slane %v1175_v35, 6 }
0x12ee   :  { %v1133_v37 = vadd.f32 %v1131_v27, %v1110_v34 }
0x12f0   :  { %v1149_v30 = vpop.xlane.xlu0 %1148 }
0x12f1   :  { %v1150_v33 = vadd.f32 %v1149_v30, %v1141_v49 }
0x12f3   :  { %v1152_v36 = vsel %vm1151_vm1, %v1150_v33, 0.0 }
0x12f4   :  { %v1154_v38 = vrot.slane %v1152_v36, 4 }
0x12f6   :  { %v1156_v40 = vadd.f32 %v1154_v38, %v1133_v37 }
0x12f8   :  { %v1179_v42 = vadd.f32 %v1177_v39, %v1156_v40 }
0x12fa   :  { %v1181_v44 = vsel %vm1180_vm2, %v1179_v42, -inf }
0x12fb   :  { %1182 = vmax.xlane.f32.xlu0 %v1181_v44 }
0x136e   :  { %v1183_v47 = vpop.xlane.xlu0 %1182 }
0x136f   :  { %v1184_v50 = vsub.f32 %v1179_v42, %v1183_v47 }
0x1371   :  { %v1185_v51 = vmul.f32 1.442695, %v1184_v50 }
0x1373   :  { %1573 = vpow2.f32 %v1185_v51 }
0x1379   :  { %v1574_v53 = vpop.eup %1573 }
0x137a   :  { %v1187_v54 = vsel %vm1180_vm2, %v1574_v53, 0.0 }
0x137b   :  { %1188 = vadd.xlane.f32.xlu1 %v1187_v54 }
0x13ee   :  { %v1189_v58 = vpop.xlane.xlu1 %1188 }
0x13ef   :  { %1575 = vrcp.f32 %v1189_v58  ;;  %v1201_v60 = vand.u32 2147483648, %v1189_v58  ;;  %v1199_v1 = vand.u32 2147483647, %v1189_v58  ;;  %vm1195_vm5 = vweird.f32 %v1189_v58 }
0x13f1   :  { %v1202_v6 = vor.u32 1.1754944e-38, %v1201_v60  ;;  %vm1200_vm7 = vcmp.eq.f32.partialorder %v1199_v1, 8.507059e+37 }
0x13f5   :  { %v1576_v7 = vpop.eup %1575 }
0x13f6   :  { %v1191_v29 = vmul.f32 %v1576_v7, %v1189_v58  ;;  %vm1196_vm4 = vweird.f32 %v1576_v7 }
0x13f7   :  { %vm1197_vm6 = vmor %vm1195_vm5, %vm1196_vm4 }
0x13f8   :  { %v1192_v59 = vsub.f32 1.0, %v1191_v29 }
0x13fa   :  { %v1193_v62 = vmul.f32 %v1576_v7, %v1192_v59 }
0x13fc   :  { %v1194_v4 = vadd.f32 %v1576_v7, %v1193_v62 }
0x13fe   :  { %v1198_v8 = vsel %vm1197_vm6, %v1576_v7, %v1194_v4 }
0x13ff   :  { %v1203_v9 = vsel %vm1200_vm7, %v1202_v6, %v1198_v8 }
0x1400   :  { %v1204_v49 = vmul.f32 %v1574_v53, %v1203_v9 }
0x1402   :  { %1377 = vst.msk [vmem:[#allocation4] sm:$0x3] %vm1180_vm2, %v1204_v49  ;;  %1230 = vperm.xlu1 %1467, %v1204_v49   ;;  %1215 = vperm.xlu0 %1466, %v1204_v49  }
0x1403   :  { %1207 = vperm.xlu2 %1465, %v1204_v49   ;;  %1399 = dma.vmem_to_hbm [thread:$0]  %s1395_s8, 32, %s1397_s17, [#allocation5]  }
0x140a   :  { %1469 = vset.pattern.permute.xlu1 %v1637_v10  ;;  %1473 = vset.pattern.permute.xlu0 %v1638_v13 }
0x140b   :  { %1468 = vset.pattern.permute.xlu2 %v1639_v12  ;;  %1260 = vperm.xlu1 %1469, %v1204_v49  }
0x140c   :  { %1245 = vperm.xlu2 %1468, %v1204_v49  }
0x1413   :  { %1471 = vset.pattern.permute.xlu1 %v1640_v14 }
0x1414   :  { %1470 = vset.pattern.permute.xlu2 %v1641_v15  ;;  %1283 = vperm.xlu1 %1471, %v1204_v49  }
0x1415   :  { %1268 = vperm.xlu2 %1470, %v1204_v49  }
0x141d   :  { %1472 = vset.pattern.permute.xlu2 %v1638_v13 }
0x141e   :  { %1298 = vperm.xlu2 %1472, %v1204_v49  }
0x145d   :  { %v1208_v16 = vpop.permute.xlu2 %1207 }
0x145e   :  { %v1210_v27 = vmul.f32 %v1208_v16, %v1773_v43  ;;  %v1212_v30 = vmul.f32 %v1208_v16, %v1920_v32 }
0x1466   :  { %v1246_v17 = vpop.permute.xlu2 %1245 }
0x1467   :  { %v1247_v31 = vrot.slane %v1246_v17, 2 }
0x1469   :  { %v1249_v40 = vmul.f32 %v1247_v31, %v1841_v41 }
0x146b   :  { %v1251_v50 = vrot.slane %v1249_v40, 6 }
0x146f   :  { %v1269_v33 = vpop.permute.xlu2 %1268 }
0x1470   :  { %v1270_v32 = vrot.slane %v1269_v33, 6 }
0x1472   :  { %v1272_v56 = vmul.f32 %v1270_v32, %v1881_v61  ;;  %v1277_v41 = vmul.f32 %v1270_v32, %v1823_v3 }
0x1474   :  { %v1231_v20 = vpop.permute.xlu1 %1230  ;;  %v1216_v21 = vpop.permute.xlu0 %1215  ;;  %v1274_v59 = vrot.slane %v1272_v56, 2  ;;  %v1279_v60 = vrot.slane %v1277_v41, 2 }
0x1475   :  { %v1232_v11 = vrot.slane %v1231_v20, 4  ;;  %v1217_v24 = vrot.slane %v1216_v21, 6 }
0x1477   :  { %v1219_v26 = vmul.f32 %v1217_v24, %v1795_v22  ;;  %v1224_v18 = vmul.f32 %v1217_v24, %v1903_v52  ;;  %v1234_v34 = vmul.f32 %v1232_v11, %v1819_v63  ;;  %v1239_v35 = vmul.f32 %v1232_v11, %v1885_v2 }
0x1478   :  { %v1254_v22 = vmul.f32 %v1247_v31, %v1867_v23  ;;  %v1299_v53 = vpop.permute.xlu2 %1298 }
0x1479   :  { %v1221_v36 = vrot.slane %v1219_v26, 2  ;;  %v1226_v37 = vrot.slane %v1224_v18, 2  ;;  %v1236_v42 = vrot.slane %v1234_v34, 4  ;;  %v1241_v52 = vrot.slane %v1239_v35, 4 }
0x147a   :  { %v1256_v51 = vrot.slane %v1254_v22, 6  ;;  %v1300_v23 = vrot.slane %v1299_v53, 2 }
0x147b   :  { %v1223_v38 = vadd.f32 %v1221_v36, %v1210_v27  ;;  %v1228_v39 = vadd.f32 %v1226_v37, %v1212_v30 }
0x147c   :  { %v1302_v62 = vmul.f32 %v1300_v23, %v1917_v28  ;;  %v1307_v1 = vmul.f32 %v1300_v23, %v1777_v45 }
0x147d   :  { %v1261_v44 = vpop.permute.xlu1 %1260  ;;  %v1238_v43 = vadd.f32 %v1236_v42, %v1223_v38  ;;  %v1243_v47 = vadd.f32 %v1241_v52, %v1228_v39 }
0x147e   :  { %v1263_v2 = vmul.f32 %v1261_v44, %v1863_v5  ;;  %v1265_v55 = vmul.f32 %v1261_v44, %v1845_v46  ;;  %v1304_v3 = vrot.slane %v1302_v62, 6  ;;  %v1309_v9 = vrot.slane %v1307_v1, 6 }
0x147f   :  { %v1253_v63 = vadd.f32 %v1251_v50, %v1238_v43  ;;  %v1258_v54 = vadd.f32 %v1256_v51, %v1243_v47 }
0x1481   :  { %v1264_v58 = vadd.f32 %v1263_v2, %v1253_v63  ;;  %v1266_v7 = vadd.f32 %v1265_v55, %v1258_v54 }
0x1483   :  { %v1276_v46 = vadd.f32 %v1274_v59, %v1264_v58  ;;  %v1281_v6 = vadd.f32 %v1279_v60, %v1266_v7 }
0x1486   :  { %v1284_v57 = vpop.permute.xlu1 %1283 }
0x1487   :  { %v1285_v29 = vrot.slane %v1284_v57, 4 }
0x1489   :  { %v1287_v4 = vmul.f32 %v1285_v29, %v1899_v48  ;;  %v1292_v5 = vmul.f32 %v1285_v29, %v1799_v25  ;;  %v1476_v25 = vld [vmem:[%s2022_s9] ss:$0 sm:$0xff] }
0x148b   :  { %v1289_v61 = vrot.slane %v1287_v4, 4  ;;  %v1294_v8 = vrot.slane %v1292_v5, 4 }
0x148d   :  { %v1291_v49 = vadd.f32 %v1289_v61, %v1276_v46  ;;  %v1296_v10 = vadd.f32 %v1294_v8, %v1281_v6 }
0x148f   :  { %v1311_v13 = vadd.f32 %v1309_v9, %v1296_v10  ;;  %v1306_v12 = vadd.f32 %v1304_v3, %v1291_v49 }
0x1491   :  { %1315 = vrot.lane.b32.xlu0 %v1311_v13, %s1633_s29  ;;  %1343 = vrot.lane.b32.xlu1 %v1306_v12, %s1633_s29 }
0x1503   :  { %v1316_v28 = vpop.permute.xlu0 %1315  ;;  %v1344_v45 = vpop.permute.xlu1 %1343 }
0x1504   :  { %1447 = vmatmul.msk.f32.vlgmr.msra.gmra.mxu0 %vm113_vm3, %v1316_v28  ;;  %1449 = vmatmul.msk.f32.vlgmr.msra.gmra.mxu1 %vm113_vm3, %v1344_v45 }
0x1581   :  { %v1339_v48 = vpop.f32.mrf.mxu0  ;;  %v1367_v14 = vpop.f32.mrf.mxu1 }
0x1582   :  { %v1368_v15 = vadd.f32 %v1367_v14, %v1339_v48 }
0x1584   :  { %v1374_v16 = vadd.f32 %v1476_v25, %v1368_v15 }
0x1586   :  { %1376 = vst.msk [vmem:[#allocation2] sm:$0x3] %vm1375_vm0, %v1374_v16 }
0x1587   :  { %1388 = dma.vmem_to_hbm [thread:$0]  %s1384_s21, 32, %s1386_s24, [#allocation3]  }
0x1588   :  { %1625 = dma.done.wait [#allocation3], 32  }
0x1589   :  { %1626 = vsyncadd [#allocation3], 4294967264 }
0x158a   :  { %1627 = dma.done.wait [#allocation5], 32  }
0x158b   :  { %1628 = vsyncadd [#allocation5], 4294967264 }
0x158c   :  { %1408 = vsyncpa [#allocation3], 1 }
0x158d   :  { %1409 = vsyncpa [#allocation5], 1 }

</bundles_post_ra>
